<compile_context>
chip_gen: v7x
topology: tpu7x:2x2x1
jax: 0.10.0
libtpu: 0.0.40
codegen_flags: <defaults>
</compile_context>

<pallas_src>
import jax
import jax.numpy as jnp
from jax import lax
from jax.experimental import pallas as pl
from jax.experimental.pallas import tpu as pltpu


# ----------------------------------------------------------------------------
# Backbone patch-conv matmul with fused SiLU + global-average-pool epilogue.
#   cols (M, K) bf16 @ w (K, F) bf16 -> feat (M, F) f32           (raw fmap)
#                                       pool (M/S, F) f32 = mean_S(silu(feat))
# Grid: (M tiles, K tiles). K is the reduction axis ("arbitrary"); the M axis
# is "parallel" (megacore sharding on v7x).
# ----------------------------------------------------------------------------
def _patchconv_kernel(a_ref, b_ref, pm_ref, feat_ref, pool_ref, acc_ref):
    k = pl.program_id(1)

    @pl.when(k == 0)
    def _():
        acc_ref[...] = jnp.zeros_like(acc_ref)

    acc_ref[...] += jnp.dot(a_ref[...], b_ref[...],
                            preferred_element_type=jnp.float32)

    @pl.when(k == pl.num_programs(1) - 1)
    def _():
        acc = acc_ref[...]
        feat_ref[...] = acc                       # raw backbone feature map
        # SiLU in f32 (v5e has no bf16 VPU/EUP); reciprocal goes to the EUP slot.
        s = acc * pl.reciprocal(1.0 + jnp.exp(-acc), approx=True)
        # Spatial mean via a tiny constant pooling matmul (each M tile holds
        # whole frames) -> avoids an in-kernel sublane-splitting reshape.
        pool_ref[...] = jnp.dot(pm_ref[...], s,
                                preferred_element_type=jnp.float32)


def patch_conv_silu_pool(cols, w_conv, *, spatial):
    M, K = cols.shape
    F = w_conv.shape[1]
    n_frames = M // spatial

    # --- M tile: whole frames per tile, <= 512 rows, 8-aligned sublanes ---
    fpt = n_frames
    while fpt > 1 and (fpt * spatial > 512
                       or n_frames % fpt != 0
                       or (fpt * spatial) % 8 != 0
                       or not (fpt == n_frames or fpt % 8 == 0)):
        fpt -= 1
    tm = fpt * spatial
    assert n_frames % fpt == 0 and tm % 8 == 0

    # --- K tile: single reduction step when K is small (kills per-step
    #     pipeline overhead), 512-wide steps otherwise.  bf16 operands keep the
    #     double-buffered VMEM footprint small (fits v7x's 64 MiB with margin).
    tk = K if K <= 4096 else 512
    assert K % tk == 0

    g = tm // spatial
    pool_mat = ((jnp.arange(tm)[None, :] // spatial
                 == jnp.arange(g)[:, None]).astype(jnp.float32) / spatial)

    grid = (M // tm, K // tk)
    return pl.pallas_call(
        _patchconv_kernel,
        out_shape=(jax.ShapeDtypeStruct((M, F), jnp.float32),
                   jax.ShapeDtypeStruct((n_frames, F), jnp.float32)),
        grid_spec=pltpu.PrefetchScalarGridSpec(
            num_scalar_prefetch=0,
            grid=grid,
            in_specs=[
                pl.BlockSpec((tm, tk), lambda i, k: (i, k)),
                pl.BlockSpec((tk, F), lambda i, k: (k, 0)),
                pl.BlockSpec((g, tm), lambda i, k: (0, 0)),
            ],
            out_specs=[
                pl.BlockSpec((tm, F), lambda i, k: (i, 0)),
                pl.BlockSpec((g, F), lambda i, k: (i, 0)),
            ],
            scratch_shapes=[pltpu.VMEM((tm, F), jnp.float32)],
        ),
        compiler_params=pltpu.CompilerParams(
            dimension_semantics=("parallel", "arbitrary")),
    )(cols, w_conv, pool_mat)


# ----------------------------------------------------------------------------
# Fused bidirectional LSTM kernel.
#   x (T, B, D) f32; wih_cat (D, 8H) bf16 = [W_ih_f | W_ih_b];
#   whh_f / whh_b (H, 4H) bf16; b_cat (1, 8H) f32 (= b_ih + b_hh, both dirs).
# Input projection is hoisted out of the recurrence; the time loop only does
# h @ W_hh (bf16 MXU) + gate math (f32).  Forward consumes t, backward T-1-t,
# so no jnp.flip / second kernel launch is needed.
# Gate order i, f, g, o (PyTorch convention); h0 = c0 = 0.
# ----------------------------------------------------------------------------
def _bilstm_kernel(x_ref, wih_ref, whh_f_ref, whh_b_ref, b_ref,
                   of_ref, ob_ref, gx_scr, h_f, c_f, h_b, c_b):
    T, B, D = x_ref.shape
    H = h_f.shape[-1]
    H4 = 4 * H

    # ---- hoisted input projection (both directions in one (D,8H) weight) ----
    # Independent of the recurrence -> the MXU pipelines these freely.
    def proj(t, carry):
        gx_scr[t] = (jnp.dot(x_ref[t].astype(jnp.bfloat16), wih_ref[...],
                             preferred_element_type=jnp.float32)
                     + b_ref[...])
        return carry
    lax.fori_loop(0, T, proj, 0, unroll=True)

    h_f[...] = jnp.zeros_like(h_f)
    c_f[...] = jnp.zeros_like(c_f)
    h_b[...] = jnp.zeros_like(h_b)
    c_b[...] = jnp.zeros_like(c_b)

    def sigmoid(z):
        return pl.reciprocal(1.0 + jnp.exp(-z), approx=True)   # EUP recip

    def cell(gates, c_prev):
        i_g = sigmoid(gates[:, 0 * H:1 * H])
        f_g = sigmoid(gates[:, 1 * H:2 * H])
        g_g = jnp.tanh(gates[:, 2 * H:3 * H])
        o_g = sigmoid(gates[:, 3 * H:4 * H])
        c_new = f_g * c_prev + i_g * g_g
        h_new = o_g * jnp.tanh(c_new)
        return h_new, c_new

    def step(t, carry):
        tb = T - 1 - t
        # forward direction (time t)
        g_f = (gx_scr[t][:, :H4]
               + jnp.dot(h_f[...].astype(jnp.bfloat16), whh_f_ref[...],
                         preferred_element_type=jnp.float32))
        hf_new, cf_new = cell(g_f, c_f[...])
        h_f[...] = hf_new
        c_f[...] = cf_new
        of_ref[t] = hf_new
        # backward direction (time T-1-t)
        g_b = (gx_scr[tb][:, H4:]
               + jnp.dot(h_b[...].astype(jnp.bfloat16), whh_b_ref[...],
                         preferred_element_type=jnp.float32))
        hb_new, cb_new = cell(g_b, c_b[...])
        h_b[...] = hb_new
        c_b[...] = cb_new
        ob_ref[tb] = hb_new
        return carry

    lax.fori_loop(0, T, step, 0)
    # TODO(synk): for large LSTM batch, block the B axis with a "parallel" grid
    # (and on v7x optionally split the two directions across the 2 TensorCores).


def bilstm(x_tbd, wih_cat, whh_f, whh_b, b_cat):
    T, B, D = x_tbd.shape
    H = whh_f.shape[0]
    return pl.pallas_call(
        _bilstm_kernel,
        out_shape=(jax.ShapeDtypeStruct((T, B, H), jnp.float32),
                   jax.ShapeDtypeStruct((T, B, H), jnp.float32)),
        scratch_shapes=[
            pltpu.VMEM((T, B, 8 * H), jnp.float32),   # hoisted input-proj gates
            pltpu.VMEM((B, H), jnp.float32),          # h forward
            pltpu.VMEM((B, H), jnp.float32),          # c forward
            pltpu.VMEM((B, H), jnp.float32),          # h backward
            pltpu.VMEM((B, H), jnp.float32),          # c backward
        ],
    )(x_tbd, wih_cat, whh_f, whh_b, b_cat)


# ----------------------------------------------------------------------------
# Fused mean(dim=1) + Linear head.  Consumes the two LSTM direction outputs
# directly (no HBM concat): mean(concat(f,b)) @ W == mean(f)@W_top + mean(b)@W_bot.
# ----------------------------------------------------------------------------
def _head_kernel(hf_ref, hb_ref, w_ref, b_ref, o_ref):
    H = hf_ref.shape[-1]
    mf = jnp.mean(hf_ref[...], axis=1).astype(jnp.bfloat16)     # (B0, H)
    mb = jnp.mean(hb_ref[...], axis=1).astype(jnp.bfloat16)     # (B0, H)
    w = w_ref[...].astype(jnp.bfloat16)                         # (2H, C)
    o_ref[...] = (jnp.dot(mf, w[:H], preferred_element_type=jnp.float32)
                  + jnp.dot(mb, w[H:], preferred_element_type=jnp.float32)
                  + b_ref[...])


def mean_linear(h_fwd, h_bwd, w, b):
    B0 = h_fwd.shape[0]
    C = w.shape[1]
    return pl.pallas_call(
        _head_kernel,
        out_shape=jax.ShapeDtypeStruct((B0, C), jnp.float32),
    )(h_fwd, h_bwd, w, b)


# ----------------------------------------------------------------------------
# Model wrapper
# ----------------------------------------------------------------------------
class PallasModel:
    def __init__(self, num_classes, latent_dim=256, hidden_dim=128,
                 bidirectional=True, in_channels=3, patch=32,
                 key=jax.random.PRNGKey(0)):
        assert bidirectional, "model instantiated with bidirectional=True"
        self.latent_dim = latent_dim
        self.hidden_dim = hidden_dim
        self.patch = patch
        self.in_channels = in_channels
        H, D, P, C = hidden_dim, latent_dim, patch, in_channels

        ks = jax.random.split(key, 8)
        k_dim = C * P * P
        # backbone stand-in conv weight, stored bf16 (MXU-native on all gens)
        self.w_conv = ((jax.random.normal(ks[0], (k_dim, D), jnp.float32)
                        * (1.0 / jnp.sqrt(k_dim))).astype(jnp.bfloat16))

        # LSTM params; b = b_ih + b_hh merged
        def lstm_params(k):
            k1, k2, k3 = jax.random.split(k, 3)
            s = 1.0 / jnp.sqrt(H)
            wih = jax.random.uniform(k1, (D, 4 * H), jnp.float32, -s, s)
            whh = jax.random.uniform(k2, (H, 4 * H), jnp.float32, -s, s)
            b = jax.random.uniform(k3, (1, 4 * H), jnp.float32, -s, s)
            return wih, whh, b
        wih_f, whh_f, b_f = lstm_params(ks[1])
        wih_b, whh_b, b_b = lstm_params(ks[2])
        # both directions' input projections merged into one (D, 8H) matmul
        self.wih_cat = jnp.concatenate([wih_f, wih_b], axis=1).astype(jnp.bfloat16)
        self.b_cat = jnp.concatenate([b_f, b_b], axis=1)          # f32 (1, 8H)
        self.whh_f = whh_f.astype(jnp.bfloat16)
        self.whh_b = whh_b.astype(jnp.bfloat16)

        # linear head (2H -> num_classes)
        s = 1.0 / jnp.sqrt(2 * H)
        self.w_lin = jax.random.uniform(ks[3], (2 * H, num_classes),
                                        jnp.float32, -s, s)
        self.b_lin = jax.random.uniform(ks[4], (1, num_classes),
                                        jnp.float32, -s, s)

    def __call__(self, x):
        # x: (batch, seq, C, H, W) float32
        B, T, C, H, W = x.shape
        P = self.patch
        F = self.latent_dim
        N = B * T
        Hp, Wp = H // P, W // P
        S = Hp * Wp
        M = N * S
        K = C * P * P

        # ----- backbone: im2col (XLA glue, bf16 cast fused into the transpose
        # write) + Pallas patch-conv matmul with fused SiLU + avg-pool epilogue
        # TODO(synk): for very large inputs, fold the patch extraction into the
        # matmul input BlockSpec instead of materializing `cols`.
        xf = x.reshape(N, C, Hp, P, Wp, P)
        cols = (xf.transpose(0, 2, 4, 1, 3, 5)
                  .reshape(M, K).astype(jnp.bfloat16))
        feat, pooled = patch_conv_silu_pool(cols, self.w_conv, spatial=S)

        # fmap kept NCHW to match torch return semantics (tiny transpose here)
        fmap = feat.reshape(N, Hp, Wp, F).transpose(0, 3, 1, 2)   # (N, F, Hp, Wp)

        feats = pooled.reshape(B, T, F)

        # ----- bidirectional LSTM (time axis = batch axis, torch quirk) -----
        h_fwd, h_bwd = bilstm(feats, self.wih_cat, self.whh_f, self.whh_b,
                              self.b_cat)                          # (B, T, H) x2

        # ----- dropout (eval mode: identity) + mean(dim=1) + linear -----
        logits = mean_linear(h_fwd, h_bwd, self.w_lin, self.b_lin)  # (B, classes)
        return fmap, logits


if __name__ == "__main__":
    key = jax.random.PRNGKey(0)
    k_model, k_data = jax.random.split(key)

    batch, seq, c, h, w = 2, 4, 3, 64, 64
    num_classes = 2

    model = PallasModel(num_classes=num_classes, latent_dim=256,
                        hidden_dim=128, bidirectional=True,
                        in_channels=c, patch=32, key=k_model)

    x = jax.random.normal(k_data, (batch, seq, c, h, w), jnp.float32)

    fmap, logits = model(x)
    jax.block_until_ready(fmap)
    jax.block_until_ready(logits)

    assert fmap.shape == (batch * seq, 256, h // 32, w // 32)
    assert logits.shape == (batch, num_classes)
    print("KERNEL_OK")
</pallas_src>

<mosaic_0001>
module attributes {stable_mosaic.version = 11 : i64} {
  func.func @_patchconv_kernel(%arg0: i32, %arg1: i32, %arg2: memref<32x3072xbf16, #tpu.memory_space<vmem>>, %arg3: memref<3072x256xbf16, #tpu.memory_space<vmem>>, %arg4: memref<8x32xf32, #tpu.memory_space<vmem>>, %arg5: memref<32x256xf32, #tpu.memory_space<vmem>>, %arg6: memref<8x256xf32, #tpu.memory_space<vmem>>, %arg7: memref<32x256xf32, #tpu.memory_space<vmem>>) attributes {dimension_semantics = [#tpu.dimension_semantics<parallel>, #tpu.dimension_semantics<arbitrary>], iteration_bounds = array<i64: 1, 1>, scalar_prefetch = 0 : i64, scratch_operands = 1 : i64, tpu.core_type = #tpu.core_type<tc>, window_params = [{transform_indices = @transform_0, window_bounds = array<i64: 32, 3072>}, {transform_indices = @transform_1, window_bounds = array<i64: 3072, 256>}, {pipeline_mode = #tpu.pipeline_mode<synchronous>, transform_indices = @transform_2, window_bounds = array<i64: 8, 32>}, {transform_indices = @transform_3, window_bounds = array<i64: 32, 256>}, {transform_indices = @transform_4, window_bounds = array<i64: 8, 256>}]} {
    %c0_i32 = arith.constant 0 : i32
    %0 = arith.cmpi eq, %arg1, %c0_i32 : i32
    %1 = arith.extui %0 : i1 to i32
    %c0_i32_0 = arith.constant 0 : i32
    %2 = arith.cmpi ne, %1, %c0_i32_0 : i32
    scf.if %2 {
      %cst_10 = arith.constant 0.000000e+00 : f32
      %12 = vector.broadcast %cst_10 : f32 to vector<32x256xf32>
      %c0_11 = arith.constant 0 : index
      %c0_12 = arith.constant 0 : index
      %13 = vector.load %arg7[%c0_11, %c0_12] : memref<32x256xf32, #tpu.memory_space<vmem>>, vector<32x256xf32>
      tpu.vector_store %arg7[%c0_11, %c0_12], %12 {strides = array<i32>} : memref<32x256xf32, #tpu.memory_space<vmem>>, vector<32x256xf32>,
    } else {
    }
    %c0 = arith.constant 0 : index
    %c0_1 = arith.constant 0 : index
    %3 = vector.load %arg7[%c0, %c0_1] : memref<32x256xf32, #tpu.memory_space<vmem>>, vector<32x256xf32>
    %c0_2 = arith.constant 0 : index
    %c0_3 = arith.constant 0 : index
    %4 = vector.load %arg2[%c0_2, %c0_3] : memref<32x3072xbf16, #tpu.memory_space<vmem>>, vector<32x3072xbf16>
    %c0_4 = arith.constant 0 : index
    %c0_5 = arith.constant 0 : index
    %5 = vector.load %arg3[%c0_4, %c0_5] : memref<3072x256xbf16, #tpu.memory_space<vmem>>, vector<3072x256xbf16>
    %cst = arith.constant dense<0.000000e+00> : vector<32x256xf32>
    %6 = tpu.matmul %4, %5, %cst {dimension_numbers = #tpu.dot_dimension_numbers<[1], [0], [0], [1], [0, 0, 1, 1], [], []>} : vector<32x3072xbf16>, vector<3072x256xbf16>, vector<32x256xf32> -> vector<32x256xf32>
    %7 = arith.addf %3, %6 : vector<32x256xf32>
    %c0_6 = arith.constant 0 : index
    %c0_7 = arith.constant 0 : index
    %8 = vector.load %arg7[%c0_6, %c0_7] : memref<32x256xf32, #tpu.memory_space<vmem>>, vector<32x256xf32>
    tpu.vector_store %arg7[%c0_6, %c0_7], %7 {strides = array<i32>} : memref<32x256xf32, #tpu.memory_space<vmem>>, vector<32x256xf32>,
    %c0_i32_8 = arith.constant 0 : i32
    %9 = arith.cmpi eq, %arg1, %c0_i32_8 : i32
    %10 = arith.extui %9 : i1 to i32
    %c0_i32_9 = arith.constant 0 : i32
    %11 = arith.cmpi ne, %10, %c0_i32_9 : i32
    scf.if %11 {
      %c0_10 = arith.constant 0 : index
      %c0_11 = arith.constant 0 : index
      %12 = vector.load %arg7[%c0_10, %c0_11] : memref<32x256xf32, #tpu.memory_space<vmem>>, vector<32x256xf32>
      %c0_12 = arith.constant 0 : index
      %c0_13 = arith.constant 0 : index
      %13 = vector.load %arg5[%c0_12, %c0_13] : memref<32x256xf32, #tpu.memory_space<vmem>>, vector<32x256xf32>
      tpu.vector_store %arg5[%c0_12, %c0_13], %12 {strides = array<i32>} : memref<32x256xf32, #tpu.memory_space<vmem>>, vector<32x256xf32>,
      %cst_14 = arith.constant 0.000000e+00 : f32
      %14 = vector.broadcast %cst_14 : f32 to vector<32x256xf32>
      %15 = arith.subf %14, %12 : vector<32x256xf32>
      %16 = math.exp %15 : vector<32x256xf32>
      %cst_15 = arith.constant 1.000000e+00 : f32
      %17 = vector.broadcast %cst_15 : f32 to vector<32x256xf32>
      %18 = arith.addf %17, %16 : vector<32x256xf32>
      %19 = tpu.reciprocal %18 {approx = true} : vector<32x256xf32> -> vector<32x256xf32>
      %20 = arith.mulf %12, %19 : vector<32x256xf32>
      %c0_16 = arith.constant 0 : index
      %c0_17 = arith.constant 0 : index
      %21 = vector.load %arg4[%c0_16, %c0_17] : memref<8x32xf32, #tpu.memory_space<vmem>>, vector<8x32xf32>
      %cst_18 = arith.constant dense<0.000000e+00> : vector<8x256xf32>
      %22 = tpu.matmul %21, %20, %cst_18 {dimension_numbers = #tpu.dot_dimension_numbers<[1], [0], [0], [1], [0, 0, 1, 1], [], []>} : vector<8x32xf32>, vector<32x256xf32>, vector<8x256xf32> -> vector<8x256xf32>
      %c0_19 = arith.constant 0 : index
      %c0_20 = arith.constant 0 : index
      %23 = vector.load %arg6[%c0_19, %c0_20] : memref<8x256xf32, #tpu.memory_space<vmem>>, vector<8x256xf32>
      tpu.vector_store %arg6[%c0_19, %c0_20], %22 {strides = array<i32>} : memref<8x256xf32, #tpu.memory_space<vmem>>, vector<8x256xf32>,
    } else {
    }
    return
  }
  func.func @transform_0(%arg0: i32, %arg1: i32) -> (i32, i32) {
    %c0_i32 = arith.constant 0 : i32
    return %arg0, %arg1 : i32, i32
  }
  func.func @transform_1(%arg0: i32, %arg1: i32) -> (i32, i32) {
    %c0_i32 = arith.constant 0 : i32
    %c0_i32_0 = arith.constant 0 : i32
    return %arg1, %c0_i32 : i32, i32
  }
  func.func @transform_2(%arg0: i32, %arg1: i32) -> (i32, i32) {
    %c0_i32 = arith.constant 0 : i32
    %c0_i32_0 = arith.constant 0 : i32
    %c0_i32_1 = arith.constant 0 : i32
    return %c0_i32, %c0_i32_0 : i32, i32
  }
  func.func @transform_3(%arg0: i32, %arg1: i32) -> (i32, i32) {
    %c0_i32 = arith.constant 0 : i32
    %c0_i32_0 = arith.constant 0 : i32
    return %arg0, %c0_i32 : i32, i32
  }
  func.func @transform_4(%arg0: i32, %arg1: i32) -> (i32, i32) {
    %c0_i32 = arith.constant 0 : i32
    %c0_i32_0 = arith.constant 0 : i32
    return %arg0, %c0_i32 : i32, i32
  }
}

</mosaic_0001>

<bundles_post_ra>
// kernel: tpu_custom_call.1
= control target key start
LH: loop header
LB: loop body
LE: loop exit
PB: predicated region body
PF: predicated region fallthrough
CT: control target
= control target key end

     0   :  { %10 = vsyncpa [#allocation4], 0  ;;  %s4972_s0 = inlined_call_operand.hbm [shape: bf16[32,3072], index: 0, kind: input, shape index: {}]   ;;  %s4973_s1 = inlined_call_operand.hbm [shape: bf16[3072,256], index: 1, kind: input, shape index: {}]   ;;  %s4974_s2 = inlined_call_operand.hbm [shape: f32[8,32], index: 2, kind: input, shape index: {}]   ;;  %s4975_s3 = inlined_call_operand.hbm [shape: f32[32,256], index: 3, kind: output, shape index: {0}]   ;;  %s4976_s4 = inlined_call_operand.hbm [shape: f32[8,256], index: 4, kind: output, shape index: {1}]  }
   0x1   :  { %11 = vsyncpa [#allocation7], 0 }
   0x2   :  { %12 = vsyncpa [#allocation5], 0 }
   0x3   :  { %13 = vsyncpa [#allocation11], 0  ;;  %s4765_s15 = smov [#allocation6]   ;;  %s4647_s19 = scalar_lea.hbm %s4973_s1, 49152 }
   0x4   :  { %s31_s16 = sshll.u32 %s4765_s15, 4  ;;  %p4648_p0 = scmp.ne.s32.totalorder %s4973_s1, %s4647_s19  ;;  %s32_s16 = int_to_ptr.vmem [resolvable:$true] %s31_s16 }
   0x5   :  { %p4651_p1 = scmp.lt.u32.totalorder %s4647_s19, %s4973_s1 }
   0x7   :  { %p4653_p2 = pnand %p4651_p1, %p4648_p0 }
   0x9   :  { %4656 = shalt.err (!%p4653_p2)
}
   0xa   :  { %s4657_s24 = scalar_lea.vmem %s32_s16, 49152  ;;  %p4662_p4 = scmp.lt.s32.totalorder %s32_s16, %s32_s16 }
   0xb   :  { %p4658_p3 = scmp.ne.s32.totalorder %s32_s16, %s4657_s24  ;;  %p4663_p5 = scmp.lt.s32.totalorder %s4657_s24, %s4657_s24 }
   0xd   :  { %p4664_p6 = por %p4663_p5, %p4662_p4 }
   0xf   :  { %p4665_p7 = pnand %p4664_p6, %p4658_p3 }
  0x11   :  { %4668 = shalt.err (!%p4665_p7)
}
  0x12   :  { %s4766_s25 = smov 128   ;;  %s4767_s26 = smov 8  }
  0x13   :  { %37 = dma.hbm_to_vmem [thread:$0]  %s4973_s1, 49152, %s32_s16, [#allocation7], %s4766_s25, %s4766_s25, %s4767_s26  }
  0x14   :  { %s4768_s29 = smov [#allocation3]   ;;  %s4669_s7 = scalar_lea.hbm %s4972_s0, 6144 }
  0x15   :  { %s19_s30 = sshll.u32 %s4768_s29, 4  ;;  %p4670_p8 = scmp.ne.s32.totalorder %s4972_s0, %s4669_s7  ;;  %s20_s30 = int_to_ptr.vmem [resolvable:$true] %s19_s30 }
  0x16   :  { %p4673_p9 = scmp.lt.u32.totalorder %s4669_s7, %s4972_s0 }
  0x18   :  { %p4675_p10 = pnand %p4673_p9, %p4670_p8 }
  0x1a   :  { %4678 = shalt.err (!%p4675_p10)
}
  0x1b   :  { %s4679_s12 = scalar_lea.vmem %s20_s30, 6144  ;;  %p4684_p12 = scmp.lt.s32.totalorder %s20_s30, %s20_s30 }
  0x1c   :  { %p4680_p11 = scmp.ne.s32.totalorder %s20_s30, %s4679_s12  ;;  %p4685_p13 = scmp.lt.s32.totalorder %s4679_s12, %s4679_s12 }
  0x1e   :  { %p4686_p0 = por %p4685_p13, %p4684_p12 }
  0x20   :  { %p4687_p1 = pnand %p4686_p0, %p4680_p11 }
  0x22   :  { %4690 = shalt.err (!%p4687_p1)
}
  0x23   :  { %s4769_s1 = smov 1536   ;;  %s4770_s13 = smov 96  }
  0x24   :  { %25 = dma.hbm_to_vmem [thread:$0]  %s4972_s0, 6144, %s20_s30, [#allocation4], %s4769_s1, %s4769_s1, %s4770_s13  }
  0x25   :  { %s4771_s16 = smov [#allocation8]   ;;  %s4691_s20 = scalar_lea.hbm %s4974_s2, 128 }
  0x26   :  { %s44_s17 = sshll.u32 %s4771_s16, 4  ;;  %p4692_p2 = scmp.ne.s32.totalorder %s4974_s2, %s4691_s20  ;;  %s45_s17 = int_to_ptr.vmem [resolvable:$true] %s44_s17 }
  0x27   :  { %p4695_p3 = scmp.lt.u32.totalorder %s4691_s20, %s4974_s2 }
  0x29   :  { %p4697_p4 = pnand %p4695_p3, %p4692_p2 }
  0x2b   :  { %4700 = shalt.err (!%p4697_p4)
}
  0x2c   :  { %s4701_s25 = scalar_lea.vmem %s45_s17, 128  ;;  %p4706_p6 = scmp.lt.s32.totalorder %s45_s17, %s45_s17 }
  0x2d   :  { %p4702_p5 = scmp.ne.s32.totalorder %s45_s17, %s4701_s25  ;;  %p4707_p7 = scmp.lt.s32.totalorder %s4701_s25, %s4701_s25 }
  0x2f   :  { %p4708_p8 = por %p4707_p7, %p4706_p6 }
  0x31   :  { %p4709_p9 = pnand %p4708_p8, %p4702_p5 }
  0x33   :  { %4712 = shalt.err (!%p4709_p9)
}
  0x34   :  { %47 = dma.hbm_to_vmem [thread:$0]  %s4974_s2, 128, %s45_s17, [#allocation7]  }
  0x35   :  { %4757 = dma.done.wait [#allocation4], 6144  }
  0x36   :  { %4758 = vsyncadd [#allocation4], 4294961152 }
  0x37   :  { %4759 = dma.done.wait [#allocation7], 49280  }
  0x38   :  { %4760 = vsyncadd [#allocation7], 4294918016  ;;  %v4039_v0 = vld [vmem:[#allocation6 + $0x4] ss:$8 sps:$4 sm:$0xff]   ;;  %v4043_v2 = vld [vmem:[#allocation6] ss:$8 sps:$4 sm:$0xff]  }
  0x39   :  { %v4041_v1 = vld [vmem:[#allocation6 + $0x604] ss:$8 sps:$4 sm:$0xff]   ;;  %2669 = vmatprep.subr.bf16.mxu1 %v4039_v0  ;;  %v4044_v3 = vld [vmem:[#allocation6 + $0x600] ss:$8 sps:$4 sm:$0xff]   ;;  %v4045_v4 = vld [vmem:[#allocation6 + $0x14] ss:$8 sps:$4 sm:$0xff]  }
  0x3a   :  { %2987 = vmatprep.subr.bf16.mxu0 %v4041_v1  ;;  %2670 = vmatpush1.bf16.msra.mxu1 %v4043_v2  ;;  %v4047_v5 = vld [vmem:[#allocation6 + $0x614] ss:$8 sps:$4 sm:$0xff]   ;;  %v4049_v6 = vld [vmem:[#allocation6 + $0x10] ss:$8 sps:$4 sm:$0xff]   ;;  %v4051_v8 = vld [vmem:[#allocation6 + $0x24] ss:$8 sps:$4 sm:$0xff]  }
  0x3b   :  { %2988 = vmatpush1.bf16.msra.mxu0 %v4044_v3  ;;  %2671 = vmatprep.subr.bf16.mxu1 %v4045_v4  ;;  %v4050_v7 = vld [vmem:[#allocation6 + $0x610] ss:$8 sps:$4 sm:$0xff]   ;;  %v4053_v9 = vld [vmem:[#allocation6 + $0x624] ss:$8 sps:$4 sm:$0xff]   ;;  %v4055_v10 = vld [vmem:[#allocation6 + $0x20] ss:$8 sps:$4 sm:$0xff]  }
  0x3c   :  { %2989 = vmatprep.subr.bf16.mxu0 %v4047_v5  ;;  %v4056_v11 = vld [vmem:[#allocation6 + $0x620] ss:$8 sps:$4 sm:$0xff]   ;;  %v4057_v12 = vld [vmem:[#allocation6 + $0x34] ss:$8 sps:$4 sm:$0xff]   ;;  %v4061_v14 = vld [vmem:[#allocation6 + $0x30] ss:$8 sps:$4 sm:$0xff]  }
  0x3d   :  { %v4059_v13 = vld [vmem:[#allocation6 + $0x634] ss:$8 sps:$4 sm:$0xff]   ;;  %v4062_v15 = vld [vmem:[#allocation6 + $0x630] ss:$8 sps:$4 sm:$0xff]   ;;  %v4063_v16 = vld [vmem:[#allocation6 + $0x44] ss:$8 sps:$4 sm:$0xff]  }
  0x3e   :  { %2672 = vmatpush1.bf16.msra.mxu1 %v4049_v6  ;;  %v4065_v17 = vld [vmem:[#allocation6 + $0x644] ss:$8 sps:$4 sm:$0xff]   ;;  %v4067_v18 = vld [vmem:[#allocation6 + $0x40] ss:$8 sps:$4 sm:$0xff]   ;;  %v4069_v20 = vld [vmem:[#allocation6 + $0x54] ss:$8 sps:$4 sm:$0xff]  }
  0x3f   :  { %2990 = vmatpush1.bf16.msra.mxu0 %v4050_v7  ;;  %2673 = vmatprep.subr.bf16.mxu1 %v4051_v8  ;;  %v4068_v19 = vld [vmem:[#allocation6 + $0x640] ss:$8 sps:$4 sm:$0xff]   ;;  %v4071_v21 = vld [vmem:[#allocation6 + $0x654] ss:$8 sps:$4 sm:$0xff]   ;;  %v4073_v22 = vld [vmem:[#allocation6 + $0x50] ss:$8 sps:$4 sm:$0xff]  }
  0x40   :  { %2991 = vmatprep.subr.bf16.mxu0 %v4053_v9  ;;  %v4074_v23 = vld [vmem:[#allocation6 + $0x650] ss:$8 sps:$4 sm:$0xff]   ;;  %v4075_v24 = vld [vmem:[#allocation6 + $0x64] ss:$8 sps:$4 sm:$0xff]   ;;  %v4079_v26 = vld [vmem:[#allocation6 + $0x60] ss:$8 sps:$4 sm:$0xff]  }
  0x41   :  { %v4077_v25 = vld [vmem:[#allocation6 + $0x664] ss:$8 sps:$4 sm:$0xff]   ;;  %v4080_v27 = vld [vmem:[#allocation6 + $0x660] ss:$8 sps:$4 sm:$0xff]   ;;  %v4081_v28 = vld [vmem:[#allocation6 + $0x74] ss:$8 sps:$4 sm:$0xff]  }
  0x42   :  { %2674 = vmatpush1.bf16.msra.mxu1 %v4055_v10  ;;  %v4083_v29 = vld [vmem:[#allocation6 + $0x674] ss:$8 sps:$4 sm:$0xff]   ;;  %v4085_v30 = vld [vmem:[#allocation6 + $0x70] ss:$8 sps:$4 sm:$0xff]   ;;  %v4087_v32 = vld [vmem:[#allocation6 + $0x84] ss:$8 sps:$4 sm:$0xff]  }
  0x43   :  { %2992 = vmatpush1.bf16.msra.mxu0 %v4056_v11  ;;  %2675 = vmatprep.subr.bf16.mxu1 %v4057_v12  ;;  %v4086_v31 = vld [vmem:[#allocation6 + $0x670] ss:$8 sps:$4 sm:$0xff]   ;;  %v4089_v33 = vld [vmem:[#allocation6 + $0x684] ss:$8 sps:$4 sm:$0xff]   ;;  %v4091_v34 = vld [vmem:[#allocation6 + $0x80] ss:$8 sps:$4 sm:$0xff]  }
  0x44   :  { %2993 = vmatprep.subr.bf16.mxu0 %v4059_v13  ;;  %v4092_v35 = vld [vmem:[#allocation6 + $0x680] ss:$8 sps:$4 sm:$0xff]   ;;  %v4093_v36 = vld [vmem:[#allocation6 + $0x94] ss:$8 sps:$4 sm:$0xff]   ;;  %v4097_v38 = vld [vmem:[#allocation6 + $0x90] ss:$8 sps:$4 sm:$0xff]  }
  0x45   :  { %v4095_v37 = vld [vmem:[#allocation6 + $0x694] ss:$8 sps:$4 sm:$0xff]   ;;  %v4098_v39 = vld [vmem:[#allocation6 + $0x690] ss:$8 sps:$4 sm:$0xff]   ;;  %v4099_v40 = vld [vmem:[#allocation6 + $0xa4] ss:$8 sps:$4 sm:$0xff]  }
  0x46   :  { %2676 = vmatpush1.bf16.msra.mxu1 %v4061_v14  ;;  %v4101_v41 = vld [vmem:[#allocation6 + $0x6a4] ss:$8 sps:$4 sm:$0xff]   ;;  %v4103_v42 = vld [vmem:[#allocation6 + $0xa0] ss:$8 sps:$4 sm:$0xff]   ;;  %v4105_v44 = vld [vmem:[#allocation6 + $0xb4] ss:$8 sps:$4 sm:$0xff]  }
  0x47   :  { %2994 = vmatpush1.bf16.msra.mxu0 %v4062_v15  ;;  %2677 = vmatprep.subr.bf16.mxu1 %v4063_v16  ;;  %v4104_v43 = vld [vmem:[#allocation6 + $0x6a0] ss:$8 sps:$4 sm:$0xff]   ;;  %v4107_v45 = vld [vmem:[#allocation6 + $0x6b4] ss:$8 sps:$4 sm:$0xff]   ;;  %v4109_v46 = vld [vmem:[#allocation6 + $0xb0] ss:$8 sps:$4 sm:$0xff]  }
  0x48   :  { %2995 = vmatprep.subr.bf16.mxu0 %v4065_v17  ;;  %v4110_v47 = vld [vmem:[#allocation6 + $0x6b0] ss:$8 sps:$4 sm:$0xff]   ;;  %v77_v48 = vld [vmem:[#allocation3] sm:$0xff]  ;;  %v4117_v58 = vld [vmem:[#allocation6 + $0xd4] ss:$8 sps:$4 sm:$0xff]   ;;  %vm3389_vm0 = vcmask 261120  }
  0x49   :  { %v89_v49 = vld [vmem:[#allocation3 + $0x60] sm:$0xff]  ;;  %v83_v53 = vld [vmem:[#allocation3 + $0x30] sm:$0xff]  ;;  %s4773_s2 = smov [#allocation9]  }
  0x4a   :  { %2678 = vmatpush1.bf16.msra.mxu1 %v4067_v18  ;;  %v4111_v50 = vld [vmem:[#allocation6 + $0xc4] ss:$8 sps:$4 sm:$0xff]   ;;  %v3499_v52 = vcombine.high %v77_v48, %v89_v49  ;;  %v95_v54 = vld [vmem:[#allocation3 + $0x90] sm:$0xff]  ;;  %v4115_v56 = vld [vmem:[#allocation6 + $0xc0] ss:$8 sps:$4 sm:$0xff]   ;;  %v3498_v8 = vcombine.low %v77_v48, %v89_v49  ;;  %s3471_s27 = sshll.u32 %s4773_s2, 4  ;;  %s3472_s27 = int_to_ptr.vmem [resolvable:$true] %s3471_s27 }
  0x4b   :  { %2996 = vmatpush1.bf16.msra.mxu0 %v4068_v19  ;;  %2679 = vmatprep.subr.bf16.mxu1 %v4069_v20  ;;  %v4113_v51 = vld [vmem:[#allocation6 + $0x6c4] ss:$8 sps:$4 sm:$0xff]   ;;  %v3511_v55 = vcombine.high %v83_v53, %v95_v54  ;;  %v4116_v57 = vld [vmem:[#allocation6 + $0x6c0] ss:$8 sps:$4 sm:$0xff]   ;;  %v4119_v59 = vld [vmem:[#allocation6 + $0x6d4] ss:$8 sps:$4 sm:$0xff]   ;;  %v3510_v10 = vcombine.low %v83_v53, %v95_v54  ;;  %p4718_p11 = scmp.lt.s32.totalorder %s3472_s27, %s3472_s27 }
  0x4c   :  { %2997 = vmatprep.subr.bf16.mxu0 %v4071_v21  ;;  %2701 = vmatprep.mubr.bf16.mxu1 %v3499_v52  ;;  %v4121_v60 = vld [vmem:[#allocation6 + $0xd0] ss:$8 sps:$4 sm:$0xff]   ;;  %v4123_v62 = vld [vmem:[#allocation6 + $0xe4] ss:$8 sps:$4 sm:$0xff]   ;;  %v4127_v0 = vld [vmem:[#allocation6 + $0xe0] ss:$8 sps:$4 sm:$0xff]  }
  0x4d   :  { %3019 = vmatprep.mubr.bf16.mxu0 %v3511_v55  ;;  %v4122_v61 = vld [vmem:[#allocation6 + $0x6d0] ss:$8 sps:$4 sm:$0xff]   ;;  %v4125_v63 = vld [vmem:[#allocation6 + $0x6e4] ss:$8 sps:$4 sm:$0xff]   ;;  %v4128_v1 = vld [vmem:[#allocation6 + $0x6e0] ss:$8 sps:$4 sm:$0xff]  }
  0x4e   :  { %2680 = vmatpush1.bf16.msra.mxu1 %v4073_v22  ;;  %v4129_v2 = vld [vmem:[#allocation6 + $0xf4] ss:$8 sps:$4 sm:$0xff]   ;;  %v4133_v4 = vld [vmem:[#allocation6 + $0xf0] ss:$8 sps:$4 sm:$0xff]   ;;  %v4137_v6 = vld [vmem:[#allocation6 + $0x104] ss:$8 sps:$4 sm:$0xff]  }
  0x4f   :  { %2998 = vmatpush1.bf16.msra.mxu0 %v4074_v23  ;;  %2681 = vmatprep.subr.bf16.mxu1 %v4075_v24  ;;  %v4131_v3 = vld [vmem:[#allocation6 + $0x6f4] ss:$8 sps:$4 sm:$0xff]   ;;  %v4134_v5 = vld [vmem:[#allocation6 + $0x6f0] ss:$8 sps:$4 sm:$0xff]   ;;  %v4140_v7 = vld [vmem:[#allocation6 + $0x704] ss:$8 sps:$4 sm:$0xff]  }
  0x50   :  { %2999 = vmatprep.subr.bf16.mxu0 %v4077_v25  ;;  %v4135_v9 = vld [vmem:[#allocation6 + $0x100] ss:$8 sps:$4 sm:$0xff]   ;;  %v4143_v12 = vld [vmem:[#allocation6 + $0x114] ss:$8 sps:$4 sm:$0xff]   ;;  %v4141_v14 = vld [vmem:[#allocation6 + $0x110] ss:$8 sps:$4 sm:$0xff]  }
  0x51   :  { %v4138_v11 = vld [vmem:[#allocation6 + $0x700] ss:$8 sps:$4 sm:$0xff]   ;;  %v4146_v13 = vld [vmem:[#allocation6 + $0x714] ss:$8 sps:$4 sm:$0xff]   ;;  %v4144_v15 = vld [vmem:[#allocation6 + $0x710] ss:$8 sps:$4 sm:$0xff]  }
  0x52   :  { %2682 = vmatpush1.bf16.msra.mxu1 %v4079_v26  ;;  %v4149_v16 = vld [vmem:[#allocation6 + $0x124] ss:$8 sps:$4 sm:$0xff]   ;;  %v4147_v18 = vld [vmem:[#allocation6 + $0x120] ss:$8 sps:$4 sm:$0xff]   ;;  %v4155_v20 = vld [vmem:[#allocation6 + $0x134] ss:$8 sps:$4 sm:$0xff]  }
  0x53   :  { %3000 = vmatpush1.bf16.msra.mxu0 %v4080_v27  ;;  %2683 = vmatprep.subr.bf16.mxu1 %v4081_v28  ;;  %v4152_v17 = vld [vmem:[#allocation6 + $0x724] ss:$8 sps:$4 sm:$0xff]   ;;  %v4150_v19 = vld [vmem:[#allocation6 + $0x720] ss:$8 sps:$4 sm:$0xff]   ;;  %v4158_v21 = vld [vmem:[#allocation6 + $0x734] ss:$8 sps:$4 sm:$0xff]  }
  0x54   :  { %3001 = vmatprep.subr.bf16.mxu0 %v4083_v29  ;;  %v4153_v22 = vld [vmem:[#allocation6 + $0x130] ss:$8 sps:$4 sm:$0xff]   ;;  %v4161_v24 = vld [vmem:[#allocation6 + $0x144] ss:$8 sps:$4 sm:$0xff]   ;;  %v4159_v26 = vld [vmem:[#allocation6 + $0x140] ss:$8 sps:$4 sm:$0xff]  }
  0x55   :  { %v4156_v23 = vld [vmem:[#allocation6 + $0x730] ss:$8 sps:$4 sm:$0xff]   ;;  %v4164_v25 = vld [vmem:[#allocation6 + $0x744] ss:$8 sps:$4 sm:$0xff]   ;;  %v4162_v27 = vld [vmem:[#allocation6 + $0x740] ss:$8 sps:$4 sm:$0xff]  }
  0x56   :  { %2684 = vmatpush1.bf16.msra.mxu1 %v4085_v30  ;;  %v4167_v28 = vld [vmem:[#allocation6 + $0x154] ss:$8 sps:$4 sm:$0xff]   ;;  %v101_v30 = vld [vmem:[#allocation3 + $0xc0] sm:$0xff]  ;;  %v4180_v52 = vld [vmem:[#allocation6 + $0x770] ss:$8 sps:$4 sm:$0xff]   ;;  %s4713_s28 = scalar_lea.vmem %s3472_s27, 1024 }
  0x57   :  { %3002 = vmatpush1.bf16.msra.mxu0 %v4086_v31  ;;  %2685 = vmatprep.subr.bf16.mxu1 %v4087_v32  ;;  %v4170_v29 = vld [vmem:[#allocation6 + $0x754] ss:$8 sps:$4 sm:$0xff]   ;;  %v113_v31 = vld [vmem:[#allocation3 + $0x120] sm:$0xff]  ;;  %v4165_v32 = vld [vmem:[#allocation6 + $0x150] ss:$8 sps:$4 sm:$0xff]   ;;  %p4714_p10 = scmp.ne.s32.totalorder %s3472_s27, %s4713_s28  ;;  %p4719_p12 = scmp.lt.s32.totalorder %s4713_s28, %s4713_s28 }
  0x58   :  { %3003 = vmatprep.subr.bf16.mxu0 %v4089_v33  ;;  %v3523_v33 = vcombine.high %v101_v30, %v113_v31  ;;  %v4844_v49 = vld [vmem:[#allocation3 + $0x38] sm:$0xff]  ;;  %v4185_v54 = vld [vmem:[#allocation6 + $0x184] ss:$8 sps:$4 sm:$0xff]  }
  0x59   :  { %v4188_v55 = vld [vmem:[#allocation6 + $0x784] ss:$8 sps:$4 sm:$0xff]   ;;  %p4720_p13 = por %p4719_p12, %p4718_p11 }
  0x5a   :  { %2686 = vmatpush1.bf16.msra.mxu1 %v4091_v34  ;;  %v4168_v34 = vld [vmem:[#allocation6 + $0x750] ss:$8 sps:$4 sm:$0xff]  }
  0x5b   :  { %3004 = vmatpush1.bf16.msra.mxu0 %v4092_v35  ;;  %2687 = vmatprep.subr.bf16.mxu1 %v4093_v36  ;;  %v107_v35 = vld [vmem:[#allocation3 + $0xf0] sm:$0xff]  ;;  %p4721_p0 = pnand %p4720_p13, %p4714_p10 }
  0x5c   :  { %3005 = vmatprep.subr.bf16.mxu0 %v4095_v37  ;;  %v119_v36 = vld [vmem:[#allocation3 + $0x150] sm:$0xff]  ;;  %v3522_v37 = vcombine.low %v101_v30, %v113_v31 }
  0x5d   :  { %v4239_v30 = vld [vmem:[#allocation6 + $0x214] ss:$8 sps:$4 sm:$0xff]  }
  0x5e   :  { %2688 = vmatpush1.bf16.msra.mxu1 %v4097_v38  ;;  %v4173_v38 = vld [vmem:[#allocation6 + $0x164] ss:$8 sps:$4 sm:$0xff]   ;;  %v4242_v31 = vld [vmem:[#allocation6 + $0x814] ss:$8 sps:$4 sm:$0xff]  }
  0x5f   :  { %3006 = vmatpush1.bf16.msra.mxu0 %v4098_v39  ;;  %2689 = vmatprep.subr.bf16.mxu1 %v4099_v40  ;;  %v3535_v39 = vcombine.high %v107_v35, %v119_v36  ;;  %v3534_v40 = vcombine.low %v107_v35, %v119_v36  ;;  %v4237_v36 = vld [vmem:[#allocation6 + $0x210] ss:$8 sps:$4 sm:$0xff]  }
  0x60   :  { %3007 = vmatprep.subr.bf16.mxu0 %v4101_v41  ;;  %v4176_v41 = vld [vmem:[#allocation6 + $0x764] ss:$8 sps:$4 sm:$0xff]  }
  0x62   :  { %2690 = vmatpush1.bf16.msra.mxu1 %v4103_v42  ;;  %v4171_v42 = vld [vmem:[#allocation6 + $0x160] ss:$8 sps:$4 sm:$0xff]  }
  0x63   :  { %3008 = vmatpush1.bf16.msra.mxu0 %v4104_v43  ;;  %2691 = vmatprep.subr.bf16.mxu1 %v4105_v44  ;;  %v4174_v43 = vld [vmem:[#allocation6 + $0x760] ss:$8 sps:$4 sm:$0xff]  }
  0x64   :  { %3009 = vmatprep.subr.bf16.mxu0 %v4107_v45  ;;  %v4838_v44 = vld [vmem:[#allocation3 + $0x8] sm:$0xff] }
  0x65   :  { %v4840_v45 = vld [vmem:[#allocation3 + $0x68] sm:$0xff] }
  0x66   :  { %2692 = vmatpush1.bf16.msra.mxu1 %v4109_v46  ;;  %v4179_v46 = vld [vmem:[#allocation6 + $0x174] ss:$8 sps:$4 sm:$0xff]   ;;  %v3501_v48 = vcombine.high %v4838_v44, %v4840_v45 }
  0x67   :  { %3010 = vmatpush1.bf16.msra.mxu0 %v4110_v47  ;;  %2693 = vmatprep.subr.bf16.mxu1 %v4111_v50  ;;  %v4182_v47 = vld [vmem:[#allocation6 + $0x774] ss:$8 sps:$4 sm:$0xff]  }
  0x68   :  { %3011 = vmatprep.subr.bf16.mxu0 %v4113_v51  ;;  %v4846_v50 = vld [vmem:[#allocation3 + $0x98] sm:$0xff] }
  0x69   :  { %v4177_v51 = vld [vmem:[#allocation6 + $0x170] ss:$8 sps:$4 sm:$0xff]   ;;  %v3513_v53 = vcombine.high %v4844_v49, %v4846_v50 }
  0x6a   :  { %2694 = vmatpush1.bf16.msra.mxu1 %v4115_v56  ;;  %v4183_v56 = vld [vmem:[#allocation6 + $0x180] ss:$8 sps:$4 sm:$0xff]  }
  0x6b   :  { %3012 = vmatpush1.bf16.msra.mxu0 %v4116_v57  ;;  %2695 = vmatprep.subr.bf16.mxu1 %v4117_v58  ;;  %v4186_v57 = vld [vmem:[#allocation6 + $0x780] ss:$8 sps:$4 sm:$0xff]   ;;  %v4191_v58 = vld [vmem:[#allocation6 + $0x194] ss:$8 sps:$4 sm:$0xff]  }
  0x6c   :  { %3013 = vmatprep.subr.bf16.mxu0 %v4119_v59  ;;  %v4194_v59 = vld [vmem:[#allocation6 + $0x794] ss:$8 sps:$4 sm:$0xff]  }
  0x6e   :  { %2696 = vmatpush1.bf16.msra.mxu1 %v4121_v60  ;;  %v4189_v60 = vld [vmem:[#allocation6 + $0x190] ss:$8 sps:$4 sm:$0xff]  }
  0x6f   :  { %3014 = vmatpush1.bf16.msra.mxu0 %v4122_v61  ;;  %2697 = vmatprep.subr.bf16.mxu1 %v4123_v62  ;;  %v4192_v61 = vld [vmem:[#allocation6 + $0x790] ss:$8 sps:$4 sm:$0xff]   ;;  %v4197_v62 = vld [vmem:[#allocation6 + $0x1a4] ss:$8 sps:$4 sm:$0xff]  }
  0x70   :  { %3015 = vmatprep.subr.bf16.mxu0 %v4125_v63  ;;  %v4200_v63 = vld [vmem:[#allocation6 + $0x7a4] ss:$8 sps:$4 sm:$0xff]  }
  0x72   :  { %2698 = vmatpush1.bf16.msra.mxu1 %v4127_v0  ;;  %v4195_v0 = vld [vmem:[#allocation6 + $0x1a0] ss:$8 sps:$4 sm:$0xff]  }
  0x73   :  { %3016 = vmatpush1.bf16.msra.mxu0 %v4128_v1  ;;  %2699 = vmatprep.subr.bf16.mxu1 %v4129_v2  ;;  %v4198_v1 = vld [vmem:[#allocation6 + $0x7a0] ss:$8 sps:$4 sm:$0xff]   ;;  %v4203_v2 = vld [vmem:[#allocation6 + $0x1b4] ss:$8 sps:$4 sm:$0xff]  }
  0x74   :  { %3017 = vmatprep.subr.bf16.mxu0 %v4131_v3  ;;  %v4206_v3 = vld [vmem:[#allocation6 + $0x7b4] ss:$8 sps:$4 sm:$0xff]  }
  0x76   :  { %2700 = vmatpush1.bf16.msra.mxu1 %v4133_v4  ;;  %v4201_v4 = vld [vmem:[#allocation6 + $0x1b0] ss:$8 sps:$4 sm:$0xff]  }
  0x77   :  { %3018 = vmatpush1.bf16.msra.mxu0 %v4134_v5  ;;  %2722 = vmatprep.subr.bf16.mxu1 %v4137_v6  ;;  %v4204_v5 = vld [vmem:[#allocation6 + $0x7b0] ss:$8 sps:$4 sm:$0xff]   ;;  %v4209_v6 = vld [vmem:[#allocation6 + $0x1c4] ss:$8 sps:$4 sm:$0xff]  }
  0x78   :  { %3040 = vmatprep.subr.bf16.mxu0 %v4140_v7  ;;  %v4212_v7 = vld [vmem:[#allocation6 + $0x7c4] ss:$8 sps:$4 sm:$0xff]  }
  0x79   :  { %2702 = vmatmul.mubr.bf16.vlgmr.msra.gmra.mrb[0].mxu1 %v3498_v8  ;;  %v4207_v8 = vld [vmem:[#allocation6 + $0x1c0] ss:$8 sps:$4 sm:$0xff]  }
  0x7a   :  { %3020 = vmatmul.mubr.bf16.vlgmr.msra.gmra.mrb[0].mxu0 %v3510_v10  ;;  %2723 = vmatpush1.bf16.msra.mxu1 %v4135_v9  ;;  %v4210_v9 = vld [vmem:[#allocation6 + $0x7c0] ss:$8 sps:$4 sm:$0xff]   ;;  %v4215_v10 = vld [vmem:[#allocation6 + $0x1d4] ss:$8 sps:$4 sm:$0xff]  }
  0x7b   :  { %3041 = vmatpush1.bf16.msra.mxu0 %v4138_v11  ;;  %2724 = vmatprep.subr.bf16.mxu1 %v4143_v12  ;;  %v4218_v11 = vld [vmem:[#allocation6 + $0x7d4] ss:$8 sps:$4 sm:$0xff]   ;;  %v4213_v12 = vld [vmem:[#allocation6 + $0x1d0] ss:$8 sps:$4 sm:$0xff]  }
  0x7c   :  { %3042 = vmatprep.subr.bf16.mxu0 %v4146_v13  ;;  %2711 = vmatprep.mubr.bf16.mxu1 %v3523_v33  ;;  %v4216_v13 = vld [vmem:[#allocation6 + $0x7d0] ss:$8 sps:$4 sm:$0xff]  }
  0x7d   :  { %3029 = vmatprep.mubr.bf16.mxu0 %v3535_v39  ;;  %v120_v33 = vld [vmem:[#allocation3 + $0x158] sm:$0xff]  ;;  %v4248_v39 = vld [vmem:[#allocation6 + $0x824] ss:$8 sps:$4 sm:$0xff]  }
  0x7e   :  { %2725 = vmatpush1.bf16.msra.mxu1 %v4141_v14  ;;  %v4221_v14 = vld [vmem:[#allocation6 + $0x1e4] ss:$8 sps:$4 sm:$0xff]  }
  0x7f   :  { %3043 = vmatpush1.bf16.msra.mxu0 %v4144_v15  ;;  %2726 = vmatprep.subr.bf16.mxu1 %v4149_v16  ;;  %v4224_v15 = vld [vmem:[#allocation6 + $0x7e4] ss:$8 sps:$4 sm:$0xff]   ;;  %v4219_v16 = vld [vmem:[#allocation6 + $0x1e0] ss:$8 sps:$4 sm:$0xff]  }
  0x80   :  { %3044 = vmatprep.subr.bf16.mxu0 %v4152_v17  ;;  %v4222_v17 = vld [vmem:[#allocation6 + $0x7e0] ss:$8 sps:$4 sm:$0xff]  }
  0x81   :  { %2712 = vmatmul.mubr.bf16.gmra.mrb[4].mxu1 %v3522_v37  ;;  %v4240_v37 = vld [vmem:[#allocation6 + $0x810] ss:$8 sps:$4 sm:$0xff]  }
  0x82   :  { %2727 = vmatpush1.bf16.msra.mxu1 %v4147_v18  ;;  %3030 = vmatmul.mubr.bf16.gmra.mrb[4].mxu0 %v3534_v40  ;;  %v4227_v18 = vld [vmem:[#allocation6 + $0x1f4] ss:$8 sps:$4 sm:$0xff]   ;;  %v4243_v40 = vld [vmem:[#allocation6 + $0x220] ss:$8 sps:$4 sm:$0xff]  }
  0x83   :  { %3045 = vmatpush1.bf16.msra.mxu0 %v4150_v19  ;;  %2728 = vmatprep.subr.bf16.mxu1 %v4155_v20  ;;  %v4230_v19 = vld [vmem:[#allocation6 + $0x7f4] ss:$8 sps:$4 sm:$0xff]   ;;  %v4225_v20 = vld [vmem:[#allocation6 + $0x1f0] ss:$8 sps:$4 sm:$0xff]  }
  0x84   :  { %3046 = vmatprep.subr.bf16.mxu0 %v4158_v21  ;;  %2754 = vmatprep.mubr.bf16.mxu1 %v3501_v48  ;;  %v4228_v21 = vld [vmem:[#allocation6 + $0x7f0] ss:$8 sps:$4 sm:$0xff]   ;;  %v4251_v48 = vld [vmem:[#allocation6 + $0x234] ss:$8 sps:$4 sm:$0xff]  }
  0x85   :  { %3072 = vmatprep.mubr.bf16.mxu0 %v3513_v53  ;;  %v4252_v53 = vld [vmem:[#allocation6 + $0x830] ss:$8 sps:$4 sm:$0xff]  }
  0x86   :  { %2729 = vmatpush1.bf16.msra.mxu1 %v4153_v22  ;;  %v4233_v22 = vld [vmem:[#allocation6 + $0x204] ss:$8 sps:$4 sm:$0xff]  }
  0x87   :  { %3047 = vmatpush1.bf16.msra.mxu0 %v4156_v23  ;;  %2730 = vmatprep.subr.bf16.mxu1 %v4161_v24  ;;  %v4236_v23 = vld [vmem:[#allocation6 + $0x804] ss:$8 sps:$4 sm:$0xff]   ;;  %v4231_v24 = vld [vmem:[#allocation6 + $0x200] ss:$8 sps:$4 sm:$0xff]  }
  0x88   :  { %3048 = vmatprep.subr.bf16.mxu0 %v4164_v25  ;;  %v4234_v25 = vld [vmem:[#allocation6 + $0x800] ss:$8 sps:$4 sm:$0xff]  }
  0x8a   :  { %2731 = vmatpush1.bf16.msra.mxu1 %v4159_v26  ;;  %v102_v26 = vld [vmem:[#allocation3 + $0xc8] sm:$0xff] }
  0x8b   :  { %3049 = vmatpush1.bf16.msra.mxu0 %v4162_v27  ;;  %2732 = vmatprep.subr.bf16.mxu1 %v4167_v28  ;;  %v3500_v27 = vcombine.low %v4838_v44, %v4840_v45  ;;  %v3512_v28 = vcombine.low %v4844_v49, %v4846_v50  ;;  %v4856_v45 = vld [vmem:[#allocation3 + $0x70] sm:$0xff] }
  0x8c   :  { %3050 = vmatprep.subr.bf16.mxu0 %v4170_v29  ;;  %v114_v29 = vld [vmem:[#allocation3 + $0x128] sm:$0xff]  ;;  %v4254_v49 = vld [vmem:[#allocation6 + $0x834] ss:$8 sps:$4 sm:$0xff]  }
  0x8e   :  { %2733 = vmatpush1.bf16.msra.mxu1 %v4165_v32  ;;  %v108_v32 = vld [vmem:[#allocation3 + $0xf8] sm:$0xff] }
  0x8f   :  { %3051 = vmatpush1.bf16.msra.mxu0 %v4168_v34  ;;  %2734 = vmatprep.subr.bf16.mxu1 %v4173_v38  ;;  %v3525_v34 = vcombine.high %v102_v26, %v114_v29  ;;  %v3537_v35 = vcombine.high %v108_v32, %v120_v33  ;;  %v4245_v38 = vld [vmem:[#allocation6 + $0x224] ss:$8 sps:$4 sm:$0xff]   ;;  %v3536_v44 = vcombine.low %v108_v32, %v120_v33  ;;  %v4315_v32 = vld [vmem:[#allocation6 + $0x2e0] ss:$8 sps:$4 sm:$0xff]  }
  0x90   :  { %3052 = vmatprep.subr.bf16.mxu0 %v4176_v41  ;;  %v4246_v41 = vld [vmem:[#allocation6 + $0x820] ss:$8 sps:$4 sm:$0xff]  }
  0x91   :  { %v4318_v33 = vld [vmem:[#allocation6 + $0x8e0] ss:$8 sps:$4 sm:$0xff]  }
  0x92   :  { %2735 = vmatpush1.bf16.msra.mxu1 %v4171_v42  ;;  %v4854_v42 = vld [vmem:[#allocation3 + $0x10] sm:$0xff] }
  0x93   :  { %3053 = vmatpush1.bf16.msra.mxu0 %v4174_v43  ;;  %2736 = vmatprep.subr.bf16.mxu1 %v4179_v46  ;;  %v3524_v43 = vcombine.low %v102_v26, %v114_v29  ;;  %v4858_v46 = vld [vmem:[#allocation3 + $0x40] sm:$0xff]  ;;  %v3503_v50 = vcombine.high %v4854_v42, %v4856_v45  ;;  %v4311_v26 = vld [vmem:[#allocation6 + $0x2d4] ss:$8 sps:$4 sm:$0xff]   ;;  %v4312_v29 = vld [vmem:[#allocation6 + $0x8d0] ss:$8 sps:$4 sm:$0xff]  }
  0x94   :  { %3054 = vmatprep.subr.bf16.mxu0 %v4182_v47  ;;  %v4860_v47 = vld [vmem:[#allocation3 + $0xa0] sm:$0xff] }
  0x96   :  { %2737 = vmatpush1.bf16.msra.mxu1 %v4177_v51  ;;  %v3515_v51 = vcombine.high %v4858_v46, %v4860_v47 }
  0x97   :  { %3055 = vmatpush1.bf16.msra.mxu0 %v4180_v52  ;;  %2738 = vmatprep.subr.bf16.mxu1 %v4185_v54  ;;  %v4249_v52 = vld [vmem:[#allocation6 + $0x230] ss:$8 sps:$4 sm:$0xff]   ;;  %v4257_v54 = vld [vmem:[#allocation6 + $0x244] ss:$8 sps:$4 sm:$0xff]  }
  0x98   :  { %3056 = vmatprep.subr.bf16.mxu0 %v4188_v55  ;;  %v4260_v55 = vld [vmem:[#allocation6 + $0x844] ss:$8 sps:$4 sm:$0xff]  }
  0x9a   :  { %2739 = vmatpush1.bf16.msra.mxu1 %v4183_v56  ;;  %v4255_v56 = vld [vmem:[#allocation6 + $0x240] ss:$8 sps:$4 sm:$0xff]  }
  0x9b   :  { %3057 = vmatpush1.bf16.msra.mxu0 %v4186_v57  ;;  %2740 = vmatprep.subr.bf16.mxu1 %v4191_v58  ;;  %v4258_v57 = vld [vmem:[#allocation6 + $0x840] ss:$8 sps:$4 sm:$0xff]   ;;  %v4263_v58 = vld [vmem:[#allocation6 + $0x254] ss:$8 sps:$4 sm:$0xff]  }
  0x9c   :  { %3058 = vmatprep.subr.bf16.mxu0 %v4194_v59  ;;  %v4266_v59 = vld [vmem:[#allocation6 + $0x854] ss:$8 sps:$4 sm:$0xff]  }
  0x9e   :  { %2741 = vmatpush1.bf16.msra.mxu1 %v4189_v60  ;;  %v4261_v60 = vld [vmem:[#allocation6 + $0x250] ss:$8 sps:$4 sm:$0xff]  }
  0x9f   :  { %3059 = vmatpush1.bf16.msra.mxu0 %v4192_v61  ;;  %2742 = vmatprep.subr.bf16.mxu1 %v4197_v62  ;;  %v4264_v61 = vld [vmem:[#allocation6 + $0x850] ss:$8 sps:$4 sm:$0xff]   ;;  %v4269_v62 = vld [vmem:[#allocation6 + $0x264] ss:$8 sps:$4 sm:$0xff]  }
  0xa0   :  { %3060 = vmatprep.subr.bf16.mxu0 %v4200_v63  ;;  %v4272_v63 = vld [vmem:[#allocation6 + $0x864] ss:$8 sps:$4 sm:$0xff]  }
  0xa2   :  { %2743 = vmatpush1.bf16.msra.mxu1 %v4195_v0  ;;  %v4267_v0 = vld [vmem:[#allocation6 + $0x260] ss:$8 sps:$4 sm:$0xff]  }
  0xa3   :  { %3061 = vmatpush1.bf16.msra.mxu0 %v4198_v1  ;;  %2744 = vmatprep.subr.bf16.mxu1 %v4203_v2  ;;  %v4270_v1 = vld [vmem:[#allocation6 + $0x860] ss:$8 sps:$4 sm:$0xff]   ;;  %v4275_v2 = vld [vmem:[#allocation6 + $0x274] ss:$8 sps:$4 sm:$0xff]  }
  0xa4   :  { %3062 = vmatprep.subr.bf16.mxu0 %v4206_v3  ;;  %v4278_v3 = vld [vmem:[#allocation6 + $0x874] ss:$8 sps:$4 sm:$0xff]  }
  0xa6   :  { %2745 = vmatpush1.bf16.msra.mxu1 %v4201_v4  ;;  %v4273_v4 = vld [vmem:[#allocation6 + $0x270] ss:$8 sps:$4 sm:$0xff]  }
  0xa7   :  { %3063 = vmatpush1.bf16.msra.mxu0 %v4204_v5  ;;  %2746 = vmatprep.subr.bf16.mxu1 %v4209_v6  ;;  %v4276_v5 = vld [vmem:[#allocation6 + $0x870] ss:$8 sps:$4 sm:$0xff]   ;;  %v4281_v6 = vld [vmem:[#allocation6 + $0x284] ss:$8 sps:$4 sm:$0xff]  }
  0xa8   :  { %3064 = vmatprep.subr.bf16.mxu0 %v4212_v7  ;;  %v4284_v7 = vld [vmem:[#allocation6 + $0x884] ss:$8 sps:$4 sm:$0xff]  }
  0xaa   :  { %2747 = vmatpush1.bf16.msra.mxu1 %v4207_v8  ;;  %v4279_v8 = vld [vmem:[#allocation6 + $0x280] ss:$8 sps:$4 sm:$0xff]  }
  0xab   :  { %3065 = vmatpush1.bf16.msra.mxu0 %v4210_v9  ;;  %2748 = vmatprep.subr.bf16.mxu1 %v4215_v10  ;;  %v4282_v9 = vld [vmem:[#allocation6 + $0x880] ss:$8 sps:$4 sm:$0xff]   ;;  %v4287_v10 = vld [vmem:[#allocation6 + $0x294] ss:$8 sps:$4 sm:$0xff]  }
  0xac   :  { %3066 = vmatprep.subr.bf16.mxu0 %v4218_v11  ;;  %v4290_v11 = vld [vmem:[#allocation6 + $0x894] ss:$8 sps:$4 sm:$0xff]  }
  0xae   :  { %2749 = vmatpush1.bf16.msra.mxu1 %v4213_v12  ;;  %v4285_v12 = vld [vmem:[#allocation6 + $0x290] ss:$8 sps:$4 sm:$0xff]  }
  0xaf   :  { %3067 = vmatpush1.bf16.msra.mxu0 %v4216_v13  ;;  %2750 = vmatprep.subr.bf16.mxu1 %v4221_v14  ;;  %v4288_v13 = vld [vmem:[#allocation6 + $0x890] ss:$8 sps:$4 sm:$0xff]   ;;  %v4293_v14 = vld [vmem:[#allocation6 + $0x2a4] ss:$8 sps:$4 sm:$0xff]  }
  0xb0   :  { %3068 = vmatprep.subr.bf16.mxu0 %v4224_v15  ;;  %v4296_v15 = vld [vmem:[#allocation6 + $0x8a4] ss:$8 sps:$4 sm:$0xff]  }
  0xb2   :  { %2751 = vmatpush1.bf16.msra.mxu1 %v4219_v16  ;;  %v4291_v16 = vld [vmem:[#allocation6 + $0x2a0] ss:$8 sps:$4 sm:$0xff]  }
  0xb3   :  { %3069 = vmatpush1.bf16.msra.mxu0 %v4222_v17  ;;  %2752 = vmatprep.subr.bf16.mxu1 %v4227_v18  ;;  %v4294_v17 = vld [vmem:[#allocation6 + $0x8a0] ss:$8 sps:$4 sm:$0xff]   ;;  %v4299_v18 = vld [vmem:[#allocation6 + $0x2b4] ss:$8 sps:$4 sm:$0xff]  }
  0xb4   :  { %3070 = vmatprep.subr.bf16.mxu0 %v4230_v19  ;;  %v4302_v19 = vld [vmem:[#allocation6 + $0x8b4] ss:$8 sps:$4 sm:$0xff]  }
  0xb6   :  { %2753 = vmatpush1.bf16.msra.mxu1 %v4225_v20  ;;  %v4297_v20 = vld [vmem:[#allocation6 + $0x2b0] ss:$8 sps:$4 sm:$0xff]  }
  0xb7   :  { %3071 = vmatpush1.bf16.msra.mxu0 %v4228_v21  ;;  %2775 = vmatprep.subr.bf16.mxu1 %v4233_v22  ;;  %v4300_v21 = vld [vmem:[#allocation6 + $0x8b0] ss:$8 sps:$4 sm:$0xff]   ;;  %v4305_v22 = vld [vmem:[#allocation6 + $0x2c4] ss:$8 sps:$4 sm:$0xff]  }
  0xb8   :  { %3093 = vmatprep.subr.bf16.mxu0 %v4236_v23  ;;  %v4308_v23 = vld [vmem:[#allocation6 + $0x8c4] ss:$8 sps:$4 sm:$0xff]  }
  0xb9   :  { %2755 = vmatmul.mubr.bf16.vlgmr.msra.gmra.mrb[0].mxu1 %v3500_v27  ;;  %v4314_v27 = vld [vmem:[#allocation6 + $0x8d4] ss:$8 sps:$4 sm:$0xff]  }
  0xba   :  { %3073 = vmatmul.mubr.bf16.vlgmr.msra.gmra.mrb[0].mxu0 %v3512_v28  ;;  %2776 = vmatpush1.bf16.msra.mxu1 %v4231_v24  ;;  %v4303_v24 = vld [vmem:[#allocation6 + $0x2c0] ss:$8 sps:$4 sm:$0xff]   ;;  %v4309_v28 = vld [vmem:[#allocation6 + $0x2d0] ss:$8 sps:$4 sm:$0xff]  }
  0xbb   :  { %3094 = vmatpush1.bf16.msra.mxu0 %v4234_v25  ;;  %2777 = vmatprep.subr.bf16.mxu1 %v4239_v30  ;;  %v4306_v25 = vld [vmem:[#allocation6 + $0x8c0] ss:$8 sps:$4 sm:$0xff]   ;;  %v4317_v30 = vld [vmem:[#allocation6 + $0x2e4] ss:$8 sps:$4 sm:$0xff]  }
  0xbc   :  { %3095 = vmatprep.subr.bf16.mxu0 %v4242_v31  ;;  %2764 = vmatprep.mubr.bf16.mxu1 %v3525_v34  ;;  %v4320_v31 = vld [vmem:[#allocation6 + $0x8e4] ss:$8 sps:$4 sm:$0xff]   ;;  %v4323_v34 = vld [vmem:[#allocation6 + $0x2f4] ss:$8 sps:$4 sm:$0xff]  }
  0xbd   :  { %3082 = vmatprep.mubr.bf16.mxu0 %v3537_v35  ;;  %v4326_v35 = vld [vmem:[#allocation6 + $0x8f4] ss:$8 sps:$4 sm:$0xff]  }
  0xbe   :  { %2778 = vmatpush1.bf16.msra.mxu1 %v4237_v36  ;;  %v4321_v36 = vld [vmem:[#allocation6 + $0x2f0] ss:$8 sps:$4 sm:$0xff]  }
  0xbf   :  { %3096 = vmatpush1.bf16.msra.mxu0 %v4240_v37  ;;  %2779 = vmatprep.subr.bf16.mxu1 %v4245_v38  ;;  %v4324_v37 = vld [vmem:[#allocation6 + $0x8f0] ss:$8 sps:$4 sm:$0xff]   ;;  %v4329_v38 = vld [vmem:[#allocation6 + $0x304] ss:$8 sps:$4 sm:$0xff]  }
  0xc0   :  { %3097 = vmatprep.subr.bf16.mxu0 %v4248_v39  ;;  %v4332_v39 = vld [vmem:[#allocation6 + $0x904] ss:$8 sps:$4 sm:$0xff]  }
  0xc1   :  { %2765 = vmatmul.mubr.bf16.gmra.mrb[4].mxu1 %v3524_v43  ;;  %v103_v43 = vld [vmem:[#allocation3 + $0xd0] sm:$0xff] }
  0xc2   :  { %3083 = vmatmul.mubr.bf16.gmra.mrb[4].mxu0 %v3536_v44  ;;  %2780 = vmatpush1.bf16.msra.mxu1 %v4243_v40  ;;  %v4327_v40 = vld [vmem:[#allocation6 + $0x300] ss:$8 sps:$4 sm:$0xff]   ;;  %v115_v44 = vld [vmem:[#allocation3 + $0x130] sm:$0xff] }
  0xc3   :  { %3098 = vmatpush1.bf16.msra.mxu0 %v4246_v41  ;;  %2781 = vmatprep.subr.bf16.mxu1 %v4251_v48  ;;  %v4330_v41 = vld [vmem:[#allocation6 + $0x900] ss:$8 sps:$4 sm:$0xff]   ;;  %v3502_v48 = vcombine.low %v4854_v42, %v4856_v45  ;;  %v4341_v42 = vld [vmem:[#allocation6 + $0x324] ss:$8 sps:$4 sm:$0xff]  }
  0xc4   :  { %3099 = vmatprep.subr.bf16.mxu0 %v4254_v49  ;;  %2807 = vmatprep.mubr.bf16.mxu1 %v3503_v50  ;;  %v3514_v49 = vcombine.low %v4858_v46, %v4860_v47  ;;  %v109_v50 = vld [vmem:[#allocation3 + $0x100] sm:$0xff] }
  0xc5   :  { %3125 = vmatprep.mubr.bf16.mxu0 %v3515_v51  ;;  %v121_v51 = vld [vmem:[#allocation3 + $0x160] sm:$0xff] }
  0xc6   :  { %2782 = vmatpush1.bf16.msra.mxu1 %v4249_v52  ;;  %v4335_v52 = vld [vmem:[#allocation6 + $0x314] ss:$8 sps:$4 sm:$0xff]   ;;  %v4344_v45 = vld [vmem:[#allocation6 + $0x924] ss:$8 sps:$4 sm:$0xff]   ;;  %v4339_v46 = vld [vmem:[#allocation6 + $0x320] ss:$8 sps:$4 sm:$0xff]  }
  0xc7   :  { %3100 = vmatpush1.bf16.msra.mxu0 %v4252_v53  ;;  %2783 = vmatprep.subr.bf16.mxu1 %v4257_v54  ;;  %v4338_v53 = vld [vmem:[#allocation6 + $0x914] ss:$8 sps:$4 sm:$0xff]   ;;  %v3527_v54 = vcombine.high %v103_v43, %v115_v44  ;;  %v4342_v47 = vld [vmem:[#allocation6 + $0x920] ss:$8 sps:$4 sm:$0xff]  }
  0xc8   :  { %3101 = vmatprep.subr.bf16.mxu0 %v4260_v55  ;;  %v3539_v55 = vcombine.high %v109_v50, %v121_v51 }
  0xca   :  { %2784 = vmatpush1.bf16.msra.mxu1 %v4255_v56  ;;  %v4333_v56 = vld [vmem:[#allocation6 + $0x310] ss:$8 sps:$4 sm:$0xff]  }
  0xcb   :  { %3102 = vmatpush1.bf16.msra.mxu0 %v4258_v57  ;;  %2785 = vmatprep.subr.bf16.mxu1 %v4263_v58  ;;  %v4336_v57 = vld [vmem:[#allocation6 + $0x910] ss:$8 sps:$4 sm:$0xff]  }
  0xcc   :  { %3103 = vmatprep.subr.bf16.mxu0 %v4266_v59  ;;  %v4870_v58 = vld [vmem:[#allocation3 + $0x18] sm:$0xff] }
  0xcd   :  { %v4872_v59 = vld [vmem:[#allocation3 + $0x78] sm:$0xff] }
  0xce   :  { %2786 = vmatpush1.bf16.msra.mxu1 %v4261_v60  ;;  %v3526_v60 = vcombine.low %v103_v43, %v115_v44  ;;  %v4407_v43 = vld [vmem:[#allocation6 + $0x3d4] ss:$8 sps:$4 sm:$0xff]  }
  0xcf   :  { %3104 = vmatpush1.bf16.msra.mxu0 %v4264_v61  ;;  %2787 = vmatprep.subr.bf16.mxu1 %v4269_v62  ;;  %v3538_v61 = vcombine.low %v109_v50, %v121_v51  ;;  %v4874_v62 = vld [vmem:[#allocation3 + $0x48] sm:$0xff]  ;;  %v4410_v44 = vld [vmem:[#allocation6 + $0x9d4] ss:$8 sps:$4 sm:$0xff]  }
  0xd0   :  { %3105 = vmatprep.subr.bf16.mxu0 %v4272_v63  ;;  %v4876_v63 = vld [vmem:[#allocation3 + $0xa8] sm:$0xff] }
  0xd1   :  { %v4413_v50 = vld [vmem:[#allocation6 + $0x3e4] ss:$8 sps:$4 sm:$0xff]  }
  0xd2   :  { %2788 = vmatpush1.bf16.msra.mxu1 %v4267_v0  ;;  %v4347_v0 = vld [vmem:[#allocation6 + $0x334] ss:$8 sps:$4 sm:$0xff]   ;;  %v4416_v51 = vld [vmem:[#allocation6 + $0x9e4] ss:$8 sps:$4 sm:$0xff]  }
  0xd3   :  { %3106 = vmatpush1.bf16.msra.mxu0 %v4270_v1  ;;  %2789 = vmatprep.subr.bf16.mxu1 %v4275_v2  ;;  %v4350_v1 = vld [vmem:[#allocation6 + $0x934] ss:$8 sps:$4 sm:$0xff]   ;;  %v3505_v2 = vcombine.high %v4870_v58, %v4872_v59 }
  0xd4   :  { %3107 = vmatprep.subr.bf16.mxu0 %v4278_v3  ;;  %v3517_v3 = vcombine.high %v4874_v62, %v4876_v63 }
  0xd6   :  { %2790 = vmatpush1.bf16.msra.mxu1 %v4273_v4  ;;  %v4345_v4 = vld [vmem:[#allocation6 + $0x330] ss:$8 sps:$4 sm:$0xff]  }
  0xd7   :  { %3108 = vmatpush1.bf16.msra.mxu0 %v4276_v5  ;;  %2791 = vmatprep.subr.bf16.mxu1 %v4281_v6  ;;  %v4348_v5 = vld [vmem:[#allocation6 + $0x930] ss:$8 sps:$4 sm:$0xff]   ;;  %v4353_v6 = vld [vmem:[#allocation6 + $0x344] ss:$8 sps:$4 sm:$0xff]  }
  0xd8   :  { %3109 = vmatprep.subr.bf16.mxu0 %v4284_v7  ;;  %v4356_v7 = vld [vmem:[#allocation6 + $0x944] ss:$8 sps:$4 sm:$0xff]  }
  0xda   :  { %2792 = vmatpush1.bf16.msra.mxu1 %v4279_v8  ;;  %v4351_v8 = vld [vmem:[#allocation6 + $0x340] ss:$8 sps:$4 sm:$0xff]  }
  0xdb   :  { %3110 = vmatpush1.bf16.msra.mxu0 %v4282_v9  ;;  %2793 = vmatprep.subr.bf16.mxu1 %v4287_v10  ;;  %v4354_v9 = vld [vmem:[#allocation6 + $0x940] ss:$8 sps:$4 sm:$0xff]   ;;  %v4359_v10 = vld [vmem:[#allocation6 + $0x354] ss:$8 sps:$4 sm:$0xff]  }
  0xdc   :  { %3111 = vmatprep.subr.bf16.mxu0 %v4290_v11  ;;  %v4362_v11 = vld [vmem:[#allocation6 + $0x954] ss:$8 sps:$4 sm:$0xff]  }
  0xde   :  { %2794 = vmatpush1.bf16.msra.mxu1 %v4285_v12  ;;  %v4357_v12 = vld [vmem:[#allocation6 + $0x350] ss:$8 sps:$4 sm:$0xff]  }
  0xdf   :  { %3112 = vmatpush1.bf16.msra.mxu0 %v4288_v13  ;;  %2795 = vmatprep.subr.bf16.mxu1 %v4293_v14  ;;  %v4360_v13 = vld [vmem:[#allocation6 + $0x950] ss:$8 sps:$4 sm:$0xff]   ;;  %v4365_v14 = vld [vmem:[#allocation6 + $0x364] ss:$8 sps:$4 sm:$0xff]  }
  0xe0   :  { %3113 = vmatprep.subr.bf16.mxu0 %v4296_v15  ;;  %v4368_v15 = vld [vmem:[#allocation6 + $0x964] ss:$8 sps:$4 sm:$0xff]  }
  0xe2   :  { %2796 = vmatpush1.bf16.msra.mxu1 %v4291_v16  ;;  %v4363_v16 = vld [vmem:[#allocation6 + $0x360] ss:$8 sps:$4 sm:$0xff]  }
  0xe3   :  { %3114 = vmatpush1.bf16.msra.mxu0 %v4294_v17  ;;  %2797 = vmatprep.subr.bf16.mxu1 %v4299_v18  ;;  %v4366_v17 = vld [vmem:[#allocation6 + $0x960] ss:$8 sps:$4 sm:$0xff]   ;;  %v4371_v18 = vld [vmem:[#allocation6 + $0x374] ss:$8 sps:$4 sm:$0xff]  }
  0xe4   :  { %3115 = vmatprep.subr.bf16.mxu0 %v4302_v19  ;;  %v4374_v19 = vld [vmem:[#allocation6 + $0x974] ss:$8 sps:$4 sm:$0xff]  }
  0xe6   :  { %2798 = vmatpush1.bf16.msra.mxu1 %v4297_v20  ;;  %v4369_v20 = vld [vmem:[#allocation6 + $0x370] ss:$8 sps:$4 sm:$0xff]  }
  0xe7   :  { %3116 = vmatpush1.bf16.msra.mxu0 %v4300_v21  ;;  %2799 = vmatprep.subr.bf16.mxu1 %v4305_v22  ;;  %v4372_v21 = vld [vmem:[#allocation6 + $0x970] ss:$8 sps:$4 sm:$0xff]   ;;  %v4377_v22 = vld [vmem:[#allocation6 + $0x384] ss:$8 sps:$4 sm:$0xff]  }
  0xe8   :  { %3117 = vmatprep.subr.bf16.mxu0 %v4308_v23  ;;  %v4380_v23 = vld [vmem:[#allocation6 + $0x984] ss:$8 sps:$4 sm:$0xff]  }
  0xea   :  { %2800 = vmatpush1.bf16.msra.mxu1 %v4303_v24  ;;  %v4375_v24 = vld [vmem:[#allocation6 + $0x380] ss:$8 sps:$4 sm:$0xff]  }
  0xeb   :  { %3118 = vmatpush1.bf16.msra.mxu0 %v4306_v25  ;;  %2801 = vmatprep.subr.bf16.mxu1 %v4311_v26  ;;  %v4378_v25 = vld [vmem:[#allocation6 + $0x980] ss:$8 sps:$4 sm:$0xff]   ;;  %v4383_v26 = vld [vmem:[#allocation6 + $0x394] ss:$8 sps:$4 sm:$0xff]  }
  0xec   :  { %3119 = vmatprep.subr.bf16.mxu0 %v4314_v27  ;;  %v4386_v27 = vld [vmem:[#allocation6 + $0x994] ss:$8 sps:$4 sm:$0xff]  }
  0xee   :  { %2802 = vmatpush1.bf16.msra.mxu1 %v4309_v28  ;;  %v4381_v28 = vld [vmem:[#allocation6 + $0x390] ss:$8 sps:$4 sm:$0xff]  }
  0xef   :  { %3120 = vmatpush1.bf16.msra.mxu0 %v4312_v29  ;;  %2803 = vmatprep.subr.bf16.mxu1 %v4317_v30  ;;  %v4384_v29 = vld [vmem:[#allocation6 + $0x990] ss:$8 sps:$4 sm:$0xff]   ;;  %v4389_v30 = vld [vmem:[#allocation6 + $0x3a4] ss:$8 sps:$4 sm:$0xff]  }
  0xf0   :  { %3121 = vmatprep.subr.bf16.mxu0 %v4320_v31  ;;  %v4392_v31 = vld [vmem:[#allocation6 + $0x9a4] ss:$8 sps:$4 sm:$0xff]  }
  0xf2   :  { %2804 = vmatpush1.bf16.msra.mxu1 %v4315_v32  ;;  %v4387_v32 = vld [vmem:[#allocation6 + $0x3a0] ss:$8 sps:$4 sm:$0xff]  }
  0xf3   :  { %3122 = vmatpush1.bf16.msra.mxu0 %v4318_v33  ;;  %2805 = vmatprep.subr.bf16.mxu1 %v4323_v34  ;;  %v4390_v33 = vld [vmem:[#allocation6 + $0x9a0] ss:$8 sps:$4 sm:$0xff]   ;;  %v4395_v34 = vld [vmem:[#allocation6 + $0x3b4] ss:$8 sps:$4 sm:$0xff]  }
  0xf4   :  { %3123 = vmatprep.subr.bf16.mxu0 %v4326_v35  ;;  %v4398_v35 = vld [vmem:[#allocation6 + $0x9b4] ss:$8 sps:$4 sm:$0xff]  }
  0xf6   :  { %2806 = vmatpush1.bf16.msra.mxu1 %v4321_v36  ;;  %v4393_v36 = vld [vmem:[#allocation6 + $0x3b0] ss:$8 sps:$4 sm:$0xff]  }
  0xf7   :  { %3124 = vmatpush1.bf16.msra.mxu0 %v4324_v37  ;;  %2828 = vmatprep.subr.bf16.mxu1 %v4329_v38  ;;  %v4396_v37 = vld [vmem:[#allocation6 + $0x9b0] ss:$8 sps:$4 sm:$0xff]   ;;  %v4401_v38 = vld [vmem:[#allocation6 + $0x3c4] ss:$8 sps:$4 sm:$0xff]  }
  0xf8   :  { %3146 = vmatprep.subr.bf16.mxu0 %v4332_v39  ;;  %v4404_v39 = vld [vmem:[#allocation6 + $0x9c4] ss:$8 sps:$4 sm:$0xff]  }
  0xf9   :  { %2808 = vmatmul.mubr.bf16.vlgmr.msra.gmra.mrb[0].mxu1 %v3502_v48  ;;  %v4405_v48 = vld [vmem:[#allocation6 + $0x3d0] ss:$8 sps:$4 sm:$0xff]  }
  0xfa   :  { %3126 = vmatmul.mubr.bf16.vlgmr.msra.gmra.mrb[0].mxu0 %v3514_v49  ;;  %2829 = vmatpush1.bf16.msra.mxu1 %v4327_v40  ;;  %v4399_v40 = vld [vmem:[#allocation6 + $0x3c0] ss:$8 sps:$4 sm:$0xff]   ;;  %v4408_v49 = vld [vmem:[#allocation6 + $0x9d0] ss:$8 sps:$4 sm:$0xff]  }
  0xfb   :  { %3147 = vmatpush1.bf16.msra.mxu0 %v4330_v41  ;;  %2830 = vmatprep.subr.bf16.mxu1 %v4335_v52  ;;  %v4402_v41 = vld [vmem:[#allocation6 + $0x9c0] ss:$8 sps:$4 sm:$0xff]  }
  0xfc   :  { %3148 = vmatprep.subr.bf16.mxu0 %v4338_v53  ;;  %2817 = vmatprep.mubr.bf16.mxu1 %v3527_v54  ;;  %v4411_v52 = vld [vmem:[#allocation6 + $0x3e0] ss:$8 sps:$4 sm:$0xff]   ;;  %v4419_v54 = vld [vmem:[#allocation6 + $0x3f4] ss:$8 sps:$4 sm:$0xff]  }
  0xfd   :  { %3135 = vmatprep.mubr.bf16.mxu0 %v3539_v55  ;;  %v4414_v53 = vld [vmem:[#allocation6 + $0x9e0] ss:$8 sps:$4 sm:$0xff]   ;;  %v4422_v55 = vld [vmem:[#allocation6 + $0x9f4] ss:$8 sps:$4 sm:$0xff]  }
  0xfe   :  { %2831 = vmatpush1.bf16.msra.mxu1 %v4333_v56  ;;  %v4417_v56 = vld [vmem:[#allocation6 + $0x3f0] ss:$8 sps:$4 sm:$0xff]  }
  0xff   :  { %3149 = vmatpush1.bf16.msra.mxu0 %v4336_v57  ;;  %2832 = vmatprep.subr.bf16.mxu1 %v4341_v42  ;;  %v4420_v57 = vld [vmem:[#allocation6 + $0x9f0] ss:$8 sps:$4 sm:$0xff]   ;;  %v4425_v42 = vld [vmem:[#allocation6 + $0x404] ss:$8 sps:$4 sm:$0xff]  }
 0x100   :  { %3150 = vmatprep.subr.bf16.mxu0 %v4344_v45  ;;  %v4428_v45 = vld [vmem:[#allocation6 + $0xa04] ss:$8 sps:$4 sm:$0xff]  }
 0x101   :  { %2818 = vmatmul.mubr.bf16.gmra.mrb[4].mxu1 %v3526_v60  ;;  %v104_v60 = vld [vmem:[#allocation3 + $0xd8] sm:$0xff] }
 0x102   :  { %3136 = vmatmul.mubr.bf16.gmra.mrb[4].mxu0 %v3538_v61  ;;  %2833 = vmatpush1.bf16.msra.mxu1 %v4339_v46  ;;  %v4423_v46 = vld [vmem:[#allocation6 + $0x400] ss:$8 sps:$4 sm:$0xff]   ;;  %v116_v61 = vld [vmem:[#allocation3 + $0x138] sm:$0xff] }
 0x103   :  { %3151 = vmatpush1.bf16.msra.mxu0 %v4342_v47  ;;  %2834 = vmatprep.subr.bf16.mxu1 %v4347_v0  ;;  %v4426_v47 = vld [vmem:[#allocation6 + $0xa00] ss:$8 sps:$4 sm:$0xff]   ;;  %v3504_v0 = vcombine.low %v4870_v58, %v4872_v59  ;;  %v4437_v58 = vld [vmem:[#allocation6 + $0x424] ss:$8 sps:$4 sm:$0xff]  }
 0x104   :  { %3152 = vmatprep.subr.bf16.mxu0 %v4350_v1  ;;  %2860 = vmatprep.mubr.bf16.mxu1 %v3505_v2  ;;  %v3516_v1 = vcombine.low %v4874_v62, %v4876_v63  ;;  %v110_v2 = vld [vmem:[#allocation3 + $0x108] sm:$0xff] }
 0x105   :  { %3178 = vmatprep.mubr.bf16.mxu0 %v3517_v3  ;;  %v122_v3 = vld [vmem:[#allocation3 + $0x168] sm:$0xff] }
 0x106   :  { %2835 = vmatpush1.bf16.msra.mxu1 %v4345_v4  ;;  %v4431_v4 = vld [vmem:[#allocation6 + $0x414] ss:$8 sps:$4 sm:$0xff]   ;;  %v4440_v59 = vld [vmem:[#allocation6 + $0xa24] ss:$8 sps:$4 sm:$0xff]   ;;  %v4435_v62 = vld [vmem:[#allocation6 + $0x420] ss:$8 sps:$4 sm:$0xff]  }
 0x107   :  { %3153 = vmatpush1.bf16.msra.mxu0 %v4348_v5  ;;  %2836 = vmatprep.subr.bf16.mxu1 %v4353_v6  ;;  %v4434_v5 = vld [vmem:[#allocation6 + $0xa14] ss:$8 sps:$4 sm:$0xff]   ;;  %v3529_v6 = vcombine.high %v104_v60, %v116_v61  ;;  %v4438_v63 = vld [vmem:[#allocation6 + $0xa20] ss:$8 sps:$4 sm:$0xff]  }
 0x108   :  { %3154 = vmatprep.subr.bf16.mxu0 %v4356_v7  ;;  %v3541_v7 = vcombine.high %v110_v2, %v122_v3 }
 0x10a   :  { %2837 = vmatpush1.bf16.msra.mxu1 %v4351_v8  ;;  %v4429_v8 = vld [vmem:[#allocation6 + $0x410] ss:$8 sps:$4 sm:$0xff]  }
 0x10b   :  { %3155 = vmatpush1.bf16.msra.mxu0 %v4354_v9  ;;  %2838 = vmatprep.subr.bf16.mxu1 %v4359_v10  ;;  %v4432_v9 = vld [vmem:[#allocation6 + $0xa10] ss:$8 sps:$4 sm:$0xff]   ;;  %v4886_v10 = vld [vmem:[#allocation3 + $0x20] sm:$0xff] }
 0x10c   :  { %3156 = vmatprep.subr.bf16.mxu0 %v4362_v11  ;;  %v3528_v11 = vcombine.low %v104_v60, %v116_v61  ;;  %v4503_v60 = vld [vmem:[#allocation6 + $0x4d4] ss:$8 sps:$4 sm:$0xff]  }
 0x10d   :  { %v4506_v61 = vld [vmem:[#allocation6 + $0xad4] ss:$8 sps:$4 sm:$0xff]  }
 0x10e   :  { %2839 = vmatpush1.bf16.msra.mxu1 %v4357_v12  ;;  %v3540_v12 = vcombine.low %v110_v2, %v122_v3  ;;  %v4509_v2 = vld [vmem:[#allocation6 + $0x4e4] ss:$8 sps:$4 sm:$0xff]  }
 0x10f   :  { %3157 = vmatpush1.bf16.msra.mxu0 %v4360_v13  ;;  %2840 = vmatprep.subr.bf16.mxu1 %v4365_v14  ;;  %v4888_v13 = vld [vmem:[#allocation3 + $0x80] sm:$0xff]  ;;  %v4890_v14 = vld [vmem:[#allocation3 + $0x50] sm:$0xff] }
 0x110   :  { %3158 = vmatprep.subr.bf16.mxu0 %v4368_v15  ;;  %v4892_v15 = vld [vmem:[#allocation3 + $0xb0] sm:$0xff]  ;;  %v4512_v3 = vld [vmem:[#allocation6 + $0xae4] ss:$8 sps:$4 sm:$0xff]  }
 0x112   :  { %2841 = vmatpush1.bf16.msra.mxu1 %v4363_v16  ;;  %v4443_v16 = vld [vmem:[#allocation6 + $0x434] ss:$8 sps:$4 sm:$0xff]  }
 0x113   :  { %3159 = vmatpush1.bf16.msra.mxu0 %v4366_v17  ;;  %2842 = vmatprep.subr.bf16.mxu1 %v4371_v18  ;;  %v4446_v17 = vld [vmem:[#allocation6 + $0xa34] ss:$8 sps:$4 sm:$0xff]   ;;  %v3507_v18 = vcombine.high %v4886_v10, %v4888_v13 }
 0x114   :  { %3160 = vmatprep.subr.bf16.mxu0 %v4374_v19  ;;  %v3519_v19 = vcombine.high %v4890_v14, %v4892_v15 }
 0x116   :  { %2843 = vmatpush1.bf16.msra.mxu1 %v4369_v20  ;;  %v4441_v20 = vld [vmem:[#allocation6 + $0x430] ss:$8 sps:$4 sm:$0xff]  }
 0x117   :  { %3161 = vmatpush1.bf16.msra.mxu0 %v4372_v21  ;;  %2844 = vmatprep.subr.bf16.mxu1 %v4377_v22  ;;  %v4444_v21 = vld [vmem:[#allocation6 + $0xa30] ss:$8 sps:$4 sm:$0xff]   ;;  %v4449_v22 = vld [vmem:[#allocation6 + $0x444] ss:$8 sps:$4 sm:$0xff]  }
 0x118   :  { %3162 = vmatprep.subr.bf16.mxu0 %v4380_v23  ;;  %v4452_v23 = vld [vmem:[#allocation6 + $0xa44] ss:$8 sps:$4 sm:$0xff]  }
 0x11a   :  { %2845 = vmatpush1.bf16.msra.mxu1 %v4375_v24  ;;  %v4447_v24 = vld [vmem:[#allocation6 + $0x440] ss:$8 sps:$4 sm:$0xff]  }
 0x11b   :  { %3163 = vmatpush1.bf16.msra.mxu0 %v4378_v25  ;;  %2846 = vmatprep.subr.bf16.mxu1 %v4383_v26  ;;  %v4450_v25 = vld [vmem:[#allocation6 + $0xa40] ss:$8 sps:$4 sm:$0xff]   ;;  %v4455_v26 = vld [vmem:[#allocation6 + $0x454] ss:$8 sps:$4 sm:$0xff]  }
 0x11c   :  { %3164 = vmatprep.subr.bf16.mxu0 %v4386_v27  ;;  %v4458_v27 = vld [vmem:[#allocation6 + $0xa54] ss:$8 sps:$4 sm:$0xff]  }
 0x11e   :  { %2847 = vmatpush1.bf16.msra.mxu1 %v4381_v28  ;;  %v4453_v28 = vld [vmem:[#allocation6 + $0x450] ss:$8 sps:$4 sm:$0xff]  }
 0x11f   :  { %3165 = vmatpush1.bf16.msra.mxu0 %v4384_v29  ;;  %2848 = vmatprep.subr.bf16.mxu1 %v4389_v30  ;;  %v4456_v29 = vld [vmem:[#allocation6 + $0xa50] ss:$8 sps:$4 sm:$0xff]   ;;  %v4461_v30 = vld [vmem:[#allocation6 + $0x464] ss:$8 sps:$4 sm:$0xff]  }
 0x120   :  { %3166 = vmatprep.subr.bf16.mxu0 %v4392_v31  ;;  %v4464_v31 = vld [vmem:[#allocation6 + $0xa64] ss:$8 sps:$4 sm:$0xff]  }
 0x122   :  { %2849 = vmatpush1.bf16.msra.mxu1 %v4387_v32  ;;  %v4459_v32 = vld [vmem:[#allocation6 + $0x460] ss:$8 sps:$4 sm:$0xff]  }
 0x123   :  { %3167 = vmatpush1.bf16.msra.mxu0 %v4390_v33  ;;  %2850 = vmatprep.subr.bf16.mxu1 %v4395_v34  ;;  %v4462_v33 = vld [vmem:[#allocation6 + $0xa60] ss:$8 sps:$4 sm:$0xff]   ;;  %v4467_v34 = vld [vmem:[#allocation6 + $0x474] ss:$8 sps:$4 sm:$0xff]  }
 0x124   :  { %3168 = vmatprep.subr.bf16.mxu0 %v4398_v35  ;;  %v4470_v35 = vld [vmem:[#allocation6 + $0xa74] ss:$8 sps:$4 sm:$0xff]  }
 0x126   :  { %2851 = vmatpush1.bf16.msra.mxu1 %v4393_v36  ;;  %v4465_v36 = vld [vmem:[#allocation6 + $0x470] ss:$8 sps:$4 sm:$0xff]  }
 0x127   :  { %3169 = vmatpush1.bf16.msra.mxu0 %v4396_v37  ;;  %2852 = vmatprep.subr.bf16.mxu1 %v4401_v38  ;;  %v4468_v37 = vld [vmem:[#allocation6 + $0xa70] ss:$8 sps:$4 sm:$0xff]   ;;  %v4473_v38 = vld [vmem:[#allocation6 + $0x484] ss:$8 sps:$4 sm:$0xff]  }
 0x128   :  { %3170 = vmatprep.subr.bf16.mxu0 %v4404_v39  ;;  %v4476_v39 = vld [vmem:[#allocation6 + $0xa84] ss:$8 sps:$4 sm:$0xff]  }
 0x12a   :  { %2853 = vmatpush1.bf16.msra.mxu1 %v4399_v40  ;;  %v4471_v40 = vld [vmem:[#allocation6 + $0x480] ss:$8 sps:$4 sm:$0xff]  }
 0x12b   :  { %3171 = vmatpush1.bf16.msra.mxu0 %v4402_v41  ;;  %2854 = vmatprep.subr.bf16.mxu1 %v4407_v43  ;;  %v4474_v41 = vld [vmem:[#allocation6 + $0xa80] ss:$8 sps:$4 sm:$0xff]   ;;  %v4479_v43 = vld [vmem:[#allocation6 + $0x494] ss:$8 sps:$4 sm:$0xff]  }
 0x12c   :  { %3172 = vmatprep.subr.bf16.mxu0 %v4410_v44  ;;  %v4482_v44 = vld [vmem:[#allocation6 + $0xa94] ss:$8 sps:$4 sm:$0xff]  }
 0x12e   :  { %2855 = vmatpush1.bf16.msra.mxu1 %v4405_v48  ;;  %v4477_v48 = vld [vmem:[#allocation6 + $0x490] ss:$8 sps:$4 sm:$0xff]  }
 0x12f   :  { %3173 = vmatpush1.bf16.msra.mxu0 %v4408_v49  ;;  %2856 = vmatprep.subr.bf16.mxu1 %v4413_v50  ;;  %v4480_v49 = vld [vmem:[#allocation6 + $0xa90] ss:$8 sps:$4 sm:$0xff]   ;;  %v4485_v50 = vld [vmem:[#allocation6 + $0x4a4] ss:$8 sps:$4 sm:$0xff]  }
 0x130   :  { %3174 = vmatprep.subr.bf16.mxu0 %v4416_v51  ;;  %v4488_v51 = vld [vmem:[#allocation6 + $0xaa4] ss:$8 sps:$4 sm:$0xff]  }
 0x132   :  { %2857 = vmatpush1.bf16.msra.mxu1 %v4411_v52  ;;  %v4483_v52 = vld [vmem:[#allocation6 + $0x4a0] ss:$8 sps:$4 sm:$0xff]  }
 0x133   :  { %3175 = vmatpush1.bf16.msra.mxu0 %v4414_v53  ;;  %2858 = vmatprep.subr.bf16.mxu1 %v4419_v54  ;;  %v4486_v53 = vld [vmem:[#allocation6 + $0xaa0] ss:$8 sps:$4 sm:$0xff]   ;;  %v4491_v54 = vld [vmem:[#allocation6 + $0x4b4] ss:$8 sps:$4 sm:$0xff]  }
 0x134   :  { %3176 = vmatprep.subr.bf16.mxu0 %v4422_v55  ;;  %v4494_v55 = vld [vmem:[#allocation6 + $0xab4] ss:$8 sps:$4 sm:$0xff]  }
 0x136   :  { %2859 = vmatpush1.bf16.msra.mxu1 %v4417_v56  ;;  %v4489_v56 = vld [vmem:[#allocation6 + $0x4b0] ss:$8 sps:$4 sm:$0xff]  }
 0x137   :  { %3177 = vmatpush1.bf16.msra.mxu0 %v4420_v57  ;;  %2881 = vmatprep.subr.bf16.mxu1 %v4425_v42  ;;  %v4492_v57 = vld [vmem:[#allocation6 + $0xab0] ss:$8 sps:$4 sm:$0xff]   ;;  %v4497_v42 = vld [vmem:[#allocation6 + $0x4c4] ss:$8 sps:$4 sm:$0xff]  }
 0x138   :  { %3199 = vmatprep.subr.bf16.mxu0 %v4428_v45  ;;  %v4500_v45 = vld [vmem:[#allocation6 + $0xac4] ss:$8 sps:$4 sm:$0xff]  }
 0x139   :  { %2861 = vmatmul.mubr.bf16.vlgmr.msra.gmra.mrb[0].mxu1 %v3504_v0  ;;  %v4501_v0 = vld [vmem:[#allocation6 + $0x4d0] ss:$8 sps:$4 sm:$0xff]  }
 0x13a   :  { %3179 = vmatmul.mubr.bf16.vlgmr.msra.gmra.mrb[0].mxu0 %v3516_v1  ;;  %2882 = vmatpush1.bf16.msra.mxu1 %v4423_v46  ;;  %v4495_v46 = vld [vmem:[#allocation6 + $0x4c0] ss:$8 sps:$4 sm:$0xff]   ;;  %v4504_v1 = vld [vmem:[#allocation6 + $0xad0] ss:$8 sps:$4 sm:$0xff]  }
 0x13b   :  { %3200 = vmatpush1.bf16.msra.mxu0 %v4426_v47  ;;  %2883 = vmatprep.subr.bf16.mxu1 %v4431_v4  ;;  %v4498_v47 = vld [vmem:[#allocation6 + $0xac0] ss:$8 sps:$4 sm:$0xff]  }
 0x13c   :  { %3201 = vmatprep.subr.bf16.mxu0 %v4434_v5  ;;  %2870 = vmatprep.mubr.bf16.mxu1 %v3529_v6  ;;  %v4507_v4 = vld [vmem:[#allocation6 + $0x4e0] ss:$8 sps:$4 sm:$0xff]   ;;  %v4515_v6 = vld [vmem:[#allocation6 + $0x4f4] ss:$8 sps:$4 sm:$0xff]  }
 0x13d   :  { %3188 = vmatprep.mubr.bf16.mxu0 %v3541_v7  ;;  %v4510_v5 = vld [vmem:[#allocation6 + $0xae0] ss:$8 sps:$4 sm:$0xff]   ;;  %v4518_v7 = vld [vmem:[#allocation6 + $0xaf4] ss:$8 sps:$4 sm:$0xff]  }
 0x13e   :  { %2884 = vmatpush1.bf16.msra.mxu1 %v4429_v8  ;;  %v4513_v8 = vld [vmem:[#allocation6 + $0x4f0] ss:$8 sps:$4 sm:$0xff]  }
 0x13f   :  { %3202 = vmatpush1.bf16.msra.mxu0 %v4432_v9  ;;  %2885 = vmatprep.subr.bf16.mxu1 %v4437_v58  ;;  %v4516_v9 = vld [vmem:[#allocation6 + $0xaf0] ss:$8 sps:$4 sm:$0xff]   ;;  %v4521_v58 = vld [vmem:[#allocation6 + $0x504] ss:$8 sps:$4 sm:$0xff]  }
 0x140   :  { %3203 = vmatprep.subr.bf16.mxu0 %v4440_v59  ;;  %v4524_v59 = vld [vmem:[#allocation6 + $0xb04] ss:$8 sps:$4 sm:$0xff]  }
 0x141   :  { %2871 = vmatmul.mubr.bf16.gmra.mrb[4].mxu1 %v3528_v11  ;;  %v3518_v11 = vcombine.low %v4890_v14, %v4892_v15  ;;  %v4533_v14 = vld [vmem:[#allocation6 + $0x524] ss:$8 sps:$4 sm:$0xff]  }
 0x142   :  { %3189 = vmatmul.mubr.bf16.gmra.mrb[4].mxu0 %v3540_v12  ;;  %2886 = vmatpush1.bf16.msra.mxu1 %v4435_v62  ;;  %v105_v62 = vld [vmem:[#allocation3 + $0xe0] sm:$0xff] }
 0x143   :  { %3204 = vmatpush1.bf16.msra.mxu0 %v4438_v63  ;;  %2887 = vmatprep.subr.bf16.mxu1 %v4443_v16  ;;  %v3506_v63 = vcombine.low %v4886_v10, %v4888_v13  ;;  %v117_v12 = vld [vmem:[#allocation3 + $0x140] sm:$0xff]  ;;  %v111_v16 = vld [vmem:[#allocation3 + $0x110] sm:$0xff] }
 0x144   :  { %3205 = vmatprep.subr.bf16.mxu0 %v4446_v17  ;;  %2913 = vmatprep.mubr.bf16.mxu1 %v3507_v18  ;;  %v123_v17 = vld [vmem:[#allocation3 + $0x170] sm:$0xff]  ;;  %v4519_v18 = vld [vmem:[#allocation6 + $0x500] ss:$8 sps:$4 sm:$0xff]   ;;  %v4536_v15 = vld [vmem:[#allocation6 + $0xb24] ss:$8 sps:$4 sm:$0xff]  }
 0x145   :  { %3231 = vmatprep.mubr.bf16.mxu0 %v3519_v19  ;;  %v4522_v19 = vld [vmem:[#allocation6 + $0xb00] ss:$8 sps:$4 sm:$0xff]   ;;  %v4525_v10 = vld [vmem:[#allocation6 + $0x510] ss:$8 sps:$4 sm:$0xff]  }
 0x146   :  { %2888 = vmatpush1.bf16.msra.mxu1 %v4441_v20  ;;  %v4527_v20 = vld [vmem:[#allocation6 + $0x514] ss:$8 sps:$4 sm:$0xff]   ;;  %v4528_v13 = vld [vmem:[#allocation6 + $0xb10] ss:$8 sps:$4 sm:$0xff]  }
 0x147   :  { %3206 = vmatpush1.bf16.msra.mxu0 %v4444_v21  ;;  %2889 = vmatprep.subr.bf16.mxu1 %v4449_v22  ;;  %v4530_v21 = vld [vmem:[#allocation6 + $0xb14] ss:$8 sps:$4 sm:$0xff]   ;;  %v3531_v22 = vcombine.high %v105_v62, %v117_v12 }
 0x148   :  { %3207 = vmatprep.subr.bf16.mxu0 %v4452_v23  ;;  %v3543_v23 = vcombine.high %v111_v16, %v123_v17 }
 0x14a   :  { %2890 = vmatpush1.bf16.msra.mxu1 %v4447_v24  ;;  %v4902_v24 = vld [vmem:[#allocation3 + $0x28] sm:$0xff] }
 0x14b   :  { %3208 = vmatpush1.bf16.msra.mxu0 %v4450_v25  ;;  %2891 = vmatprep.subr.bf16.mxu1 %v4455_v26  ;;  %v3530_v25 = vcombine.low %v105_v62, %v117_v12  ;;  %v3542_v26 = vcombine.low %v111_v16, %v123_v17  ;;  %v4591_v62 = vld [vmem:[#allocation6 + $0x5c0] ss:$8 sps:$4 sm:$0xff]   ;;  %v4602_v12 = vld [vmem:[#allocation6 + $0xbd4] ss:$8 sps:$4 sm:$0xff]   ;;  %v4597_v16 = vld [vmem:[#allocation6 + $0x5d0] ss:$8 sps:$4 sm:$0xff]  }
 0x14c   :  { %3209 = vmatprep.subr.bf16.mxu0 %v4458_v27  ;;  %v4904_v27 = vld [vmem:[#allocation3 + $0x88] sm:$0xff]  ;;  %v4600_v17 = vld [vmem:[#allocation6 + $0xbd0] ss:$8 sps:$4 sm:$0xff]  }
 0x14e   :  { %2892 = vmatpush1.bf16.msra.mxu1 %v4453_v28  ;;  %v4906_v28 = vld [vmem:[#allocation3 + $0x58] sm:$0xff] }
 0x14f   :  { %3210 = vmatpush1.bf16.msra.mxu0 %v4456_v29  ;;  %2893 = vmatprep.subr.bf16.mxu1 %v4461_v30  ;;  %v4908_v29 = vld [vmem:[#allocation3 + $0xb8] sm:$0xff]  ;;  %v4531_v30 = vld [vmem:[#allocation6 + $0x520] ss:$8 sps:$4 sm:$0xff]  }
 0x150   :  { %3211 = vmatprep.subr.bf16.mxu0 %v4464_v31  ;;  %v4534_v31 = vld [vmem:[#allocation6 + $0xb20] ss:$8 sps:$4 sm:$0xff]  }
 0x152   :  { %2894 = vmatpush1.bf16.msra.mxu1 %v4459_v32  ;;  %v4539_v32 = vld [vmem:[#allocation6 + $0x534] ss:$8 sps:$4 sm:$0xff]  }
 0x153   :  { %3212 = vmatpush1.bf16.msra.mxu0 %v4462_v33  ;;  %2895 = vmatprep.subr.bf16.mxu1 %v4467_v34  ;;  %v4542_v33 = vld [vmem:[#allocation6 + $0xb34] ss:$8 sps:$4 sm:$0xff]   ;;  %v3509_v34 = vcombine.high %v4902_v24, %v4904_v27 }
 0x154   :  { %3213 = vmatprep.subr.bf16.mxu0 %v4470_v35  ;;  %v3521_v35 = vcombine.high %v4906_v28, %v4908_v29 }
 0x156   :  { %2896 = vmatpush1.bf16.msra.mxu1 %v4465_v36  ;;  %v4537_v36 = vld [vmem:[#allocation6 + $0x530] ss:$8 sps:$4 sm:$0xff]  }
 0x157   :  { %3214 = vmatpush1.bf16.msra.mxu0 %v4468_v37  ;;  %2897 = vmatprep.subr.bf16.mxu1 %v4473_v38  ;;  %v4540_v37 = vld [vmem:[#allocation6 + $0xb30] ss:$8 sps:$4 sm:$0xff]   ;;  %v4545_v38 = vld [vmem:[#allocation6 + $0x544] ss:$8 sps:$4 sm:$0xff]  }
 0x158   :  { %3215 = vmatprep.subr.bf16.mxu0 %v4476_v39  ;;  %v4548_v39 = vld [vmem:[#allocation6 + $0xb44] ss:$8 sps:$4 sm:$0xff]  }
 0x15a   :  { %2898 = vmatpush1.bf16.msra.mxu1 %v4471_v40  ;;  %v4543_v40 = vld [vmem:[#allocation6 + $0x540] ss:$8 sps:$4 sm:$0xff]  }
 0x15b   :  { %3216 = vmatpush1.bf16.msra.mxu0 %v4474_v41  ;;  %2899 = vmatprep.subr.bf16.mxu1 %v4479_v43  ;;  %v4546_v41 = vld [vmem:[#allocation6 + $0xb40] ss:$8 sps:$4 sm:$0xff]   ;;  %v4551_v43 = vld [vmem:[#allocation6 + $0x554] ss:$8 sps:$4 sm:$0xff]  }
 0x15c   :  { %3217 = vmatprep.subr.bf16.mxu0 %v4482_v44  ;;  %v4554_v44 = vld [vmem:[#allocation6 + $0xb54] ss:$8 sps:$4 sm:$0xff]  }
 0x15e   :  { %2900 = vmatpush1.bf16.msra.mxu1 %v4477_v48  ;;  %v4549_v48 = vld [vmem:[#allocation6 + $0x550] ss:$8 sps:$4 sm:$0xff]  }
 0x15f   :  { %3218 = vmatpush1.bf16.msra.mxu0 %v4480_v49  ;;  %2901 = vmatprep.subr.bf16.mxu1 %v4485_v50  ;;  %v4552_v49 = vld [vmem:[#allocation6 + $0xb50] ss:$8 sps:$4 sm:$0xff]   ;;  %v4557_v50 = vld [vmem:[#allocation6 + $0x564] ss:$8 sps:$4 sm:$0xff]  }
 0x160   :  { %3219 = vmatprep.subr.bf16.mxu0 %v4488_v51  ;;  %v4560_v51 = vld [vmem:[#allocation6 + $0xb64] ss:$8 sps:$4 sm:$0xff]  }
 0x162   :  { %2902 = vmatpush1.bf16.msra.mxu1 %v4483_v52  ;;  %v4555_v52 = vld [vmem:[#allocation6 + $0x560] ss:$8 sps:$4 sm:$0xff]  }
 0x163   :  { %3220 = vmatpush1.bf16.msra.mxu0 %v4486_v53  ;;  %2903 = vmatprep.subr.bf16.mxu1 %v4491_v54  ;;  %v4558_v53 = vld [vmem:[#allocation6 + $0xb60] ss:$8 sps:$4 sm:$0xff]   ;;  %v4563_v54 = vld [vmem:[#allocation6 + $0x574] ss:$8 sps:$4 sm:$0xff]  }
 0x164   :  { %3221 = vmatprep.subr.bf16.mxu0 %v4494_v55  ;;  %v4566_v55 = vld [vmem:[#allocation6 + $0xb74] ss:$8 sps:$4 sm:$0xff]  }
 0x166   :  { %2904 = vmatpush1.bf16.msra.mxu1 %v4489_v56  ;;  %v4561_v56 = vld [vmem:[#allocation6 + $0x570] ss:$8 sps:$4 sm:$0xff]  }
 0x167   :  { %3222 = vmatpush1.bf16.msra.mxu0 %v4492_v57  ;;  %2905 = vmatprep.subr.bf16.mxu1 %v4497_v42  ;;  %v4564_v57 = vld [vmem:[#allocation6 + $0xb70] ss:$8 sps:$4 sm:$0xff]   ;;  %v4569_v42 = vld [vmem:[#allocation6 + $0x584] ss:$8 sps:$4 sm:$0xff]  }
 0x168   :  { %3223 = vmatprep.subr.bf16.mxu0 %v4500_v45  ;;  %v4572_v45 = vld [vmem:[#allocation6 + $0xb84] ss:$8 sps:$4 sm:$0xff]  }
 0x16a   :  { %2906 = vmatpush1.bf16.msra.mxu1 %v4495_v46  ;;  %v4567_v46 = vld [vmem:[#allocation6 + $0x580] ss:$8 sps:$4 sm:$0xff]  }
 0x16b   :  { %3224 = vmatpush1.bf16.msra.mxu0 %v4498_v47  ;;  %2907 = vmatprep.subr.bf16.mxu1 %v4503_v60  ;;  %v4570_v47 = vld [vmem:[#allocation6 + $0xb80] ss:$8 sps:$4 sm:$0xff]   ;;  %v4575_v60 = vld [vmem:[#allocation6 + $0x594] ss:$8 sps:$4 sm:$0xff]  }
 0x16c   :  { %3225 = vmatprep.subr.bf16.mxu0 %v4506_v61  ;;  %v4578_v61 = vld [vmem:[#allocation6 + $0xb94] ss:$8 sps:$4 sm:$0xff]  }
 0x16e   :  { %2908 = vmatpush1.bf16.msra.mxu1 %v4501_v0  ;;  %v4573_v0 = vld [vmem:[#allocation6 + $0x590] ss:$8 sps:$4 sm:$0xff]  }
 0x16f   :  { %3226 = vmatpush1.bf16.msra.mxu0 %v4504_v1  ;;  %2909 = vmatprep.subr.bf16.mxu1 %v4509_v2  ;;  %v4576_v1 = vld [vmem:[#allocation6 + $0xb90] ss:$8 sps:$4 sm:$0xff]   ;;  %v4581_v2 = vld [vmem:[#allocation6 + $0x5a4] ss:$8 sps:$4 sm:$0xff]  }
 0x170   :  { %3227 = vmatprep.subr.bf16.mxu0 %v4512_v3  ;;  %v4584_v3 = vld [vmem:[#allocation6 + $0xba4] ss:$8 sps:$4 sm:$0xff]  }
 0x172   :  { %2910 = vmatpush1.bf16.msra.mxu1 %v4507_v4  ;;  %v4579_v4 = vld [vmem:[#allocation6 + $0x5a0] ss:$8 sps:$4 sm:$0xff]  }
 0x173   :  { %3228 = vmatpush1.bf16.msra.mxu0 %v4510_v5  ;;  %2911 = vmatprep.subr.bf16.mxu1 %v4515_v6  ;;  %v4582_v5 = vld [vmem:[#allocation6 + $0xba0] ss:$8 sps:$4 sm:$0xff]   ;;  %v4587_v6 = vld [vmem:[#allocation6 + $0x5b4] ss:$8 sps:$4 sm:$0xff]  }
 0x174   :  { %3229 = vmatprep.subr.bf16.mxu0 %v4518_v7  ;;  %v4590_v7 = vld [vmem:[#allocation6 + $0xbb4] ss:$8 sps:$4 sm:$0xff]  }
 0x176   :  { %2912 = vmatpush1.bf16.msra.mxu1 %v4513_v8  ;;  %v4585_v8 = vld [vmem:[#allocation6 + $0x5b0] ss:$8 sps:$4 sm:$0xff]  }
 0x177   :  { %3230 = vmatpush1.bf16.msra.mxu0 %v4516_v9  ;;  %2934 = vmatprep.subr.bf16.mxu1 %v4521_v58  ;;  %v4588_v9 = vld [vmem:[#allocation6 + $0xbb0] ss:$8 sps:$4 sm:$0xff]   ;;  %v4593_v58 = vld [vmem:[#allocation6 + $0x5c4] ss:$8 sps:$4 sm:$0xff]  }
 0x178   :  { %3252 = vmatprep.subr.bf16.mxu0 %v4524_v59  ;;  %v4596_v59 = vld [vmem:[#allocation6 + $0xbc4] ss:$8 sps:$4 sm:$0xff]  }
 0x179   :  { %2914 = vmatmul.mubr.bf16.vlgmr.msra.gmra.mrb[0].mxu1 %v3506_v63  ;;  %v4594_v63 = vld [vmem:[#allocation6 + $0xbc0] ss:$8 sps:$4 sm:$0xff]  }
 0x17a   :  { %3232 = vmatmul.mubr.bf16.vlgmr.msra.gmra.mrb[0].mxu0 %v3518_v11  ;;  %2935 = vmatpush1.bf16.msra.mxu1 %v4519_v18  ;;  %v4599_v11 = vld [vmem:[#allocation6 + $0x5d4] ss:$8 sps:$4 sm:$0xff]   ;;  %v4605_v18 = vld [vmem:[#allocation6 + $0x5e4] ss:$8 sps:$4 sm:$0xff]  }
 0x17b   :  { %3253 = vmatpush1.bf16.msra.mxu0 %v4522_v19  ;;  %2936 = vmatprep.subr.bf16.mxu1 %v4527_v20  ;;  %v4608_v19 = vld [vmem:[#allocation6 + $0xbe4] ss:$8 sps:$4 sm:$0xff]   ;;  %v4603_v20 = vld [vmem:[#allocation6 + $0x5e0] ss:$8 sps:$4 sm:$0xff]  }
 0x17c   :  { %3254 = vmatprep.subr.bf16.mxu0 %v4530_v21  ;;  %2923 = vmatprep.mubr.bf16.mxu1 %v3531_v22  ;;  %v4606_v21 = vld [vmem:[#allocation6 + $0xbe0] ss:$8 sps:$4 sm:$0xff]   ;;  %v4611_v22 = vld [vmem:[#allocation6 + $0x5f4] ss:$8 sps:$4 sm:$0xff]  }
 0x17d   :  { %3241 = vmatprep.mubr.bf16.mxu0 %v3543_v23  ;;  %v4614_v23 = vld [vmem:[#allocation6 + $0xbf4] ss:$8 sps:$4 sm:$0xff]  }
 0x17e   :  { %2937 = vmatpush1.bf16.msra.mxu1 %v4525_v10  ;;  %v4609_v10 = vld [vmem:[#allocation6 + $0x5f0] ss:$8 sps:$4 sm:$0xff]  }
 0x17f   :  { %3255 = vmatpush1.bf16.msra.mxu0 %v4528_v13  ;;  %2938 = vmatprep.subr.bf16.mxu1 %v4533_v14  ;;  %v4612_v13 = vld [vmem:[#allocation6 + $0xbf0] ss:$8 sps:$4 sm:$0xff]   ;;  %v106_v14 = vld [vmem:[#allocation3 + $0xe8] sm:$0xff] }
 0x180   :  { %3256 = vmatprep.subr.bf16.mxu0 %v4536_v15  ;;  %v118_v15 = vld [vmem:[#allocation3 + $0x148] sm:$0xff] }
 0x181   :  { %2924 = vmatmul.mubr.bf16.gmra.mrb[4].mxu1 %v3530_v25  ;;  %v112_v25 = vld [vmem:[#allocation3 + $0x118] sm:$0xff] }
 0x182   :  { %3242 = vmatmul.mubr.bf16.gmra.mrb[4].mxu0 %v3542_v26  ;;  %2939 = vmatpush1.bf16.msra.mxu1 %v4531_v30  ;;  %v124_v26 = vld [vmem:[#allocation3 + $0x178] sm:$0xff]  ;;  %v3508_v30 = vcombine.low %v4902_v24, %v4904_v27 }
 0x183   :  { %3257 = vmatpush1.bf16.msra.mxu0 %v4534_v31  ;;  %2940 = vmatprep.subr.bf16.mxu1 %v4539_v32  ;;  %v3520_v31 = vcombine.low %v4906_v28, %v4908_v29  ;;  %v3533_v32 = vcombine.high %v106_v14, %v118_v15 }
 0x184   :  { %3258 = vmatprep.subr.bf16.mxu0 %v4542_v33  ;;  %2966 = vmatprep.mubr.bf16.mxu1 %v3509_v34  ;;  %v3545_v33 = vcombine.high %v112_v25, %v124_v26  ;;  %v3532_v34 = vcombine.low %v106_v14, %v118_v15 }
 0x185   :  { %3284 = vmatprep.mubr.bf16.mxu0 %v3521_v35  ;;  %v3544_v35 = vcombine.low %v112_v25, %v124_v26 }
 0x186   :  { %2941 = vmatpush1.bf16.msra.mxu1 %v4537_v36  ;;  %v4772_v36 = vmov 0.0  }
 0x187   :  { %3259 = vmatpush1.bf16.msra.mxu0 %v4540_v37  ;;  %2942 = vmatprep.subr.bf16.mxu1 %v4545_v38 }
 0x188   :  { %3260 = vmatprep.subr.bf16.mxu0 %v4548_v39 }
 0x18a   :  { %2943 = vmatpush1.bf16.msra.mxu1 %v4543_v40 }
 0x18b   :  { %3261 = vmatpush1.bf16.msra.mxu0 %v4546_v41  ;;  %2944 = vmatprep.subr.bf16.mxu1 %v4551_v43 }
 0x18c   :  { %3262 = vmatprep.subr.bf16.mxu0 %v4554_v44 }
 0x18e   :  { %2945 = vmatpush1.bf16.msra.mxu1 %v4549_v48 }
 0x18f   :  { %3263 = vmatpush1.bf16.msra.mxu0 %v4552_v49  ;;  %2946 = vmatprep.subr.bf16.mxu1 %v4557_v50 }
 0x190   :  { %3264 = vmatprep.subr.bf16.mxu0 %v4560_v51 }
 0x192   :  { %2947 = vmatpush1.bf16.msra.mxu1 %v4555_v52 }
 0x193   :  { %3265 = vmatpush1.bf16.msra.mxu0 %v4558_v53  ;;  %2948 = vmatprep.subr.bf16.mxu1 %v4563_v54 }
 0x194   :  { %3266 = vmatprep.subr.bf16.mxu0 %v4566_v55 }
 0x196   :  { %2949 = vmatpush1.bf16.msra.mxu1 %v4561_v56 }
 0x197   :  { %3267 = vmatpush1.bf16.msra.mxu0 %v4564_v57  ;;  %2950 = vmatprep.subr.bf16.mxu1 %v4569_v42 }
 0x198   :  { %3268 = vmatprep.subr.bf16.mxu0 %v4572_v45 }
 0x19a   :  { %2951 = vmatpush1.bf16.msra.mxu1 %v4567_v46 }
 0x19b   :  { %3269 = vmatpush1.bf16.msra.mxu0 %v4570_v47  ;;  %2952 = vmatprep.subr.bf16.mxu1 %v4575_v60 }
 0x19c   :  { %3270 = vmatprep.subr.bf16.mxu0 %v4578_v61 }
 0x19e   :  { %2953 = vmatpush1.bf16.msra.mxu1 %v4573_v0 }
 0x19f   :  { %3271 = vmatpush1.bf16.msra.mxu0 %v4576_v1  ;;  %2954 = vmatprep.subr.bf16.mxu1 %v4581_v2 }
 0x1a0   :  { %3272 = vmatprep.subr.bf16.mxu0 %v4584_v3 }
 0x1a2   :  { %2955 = vmatpush1.bf16.msra.mxu1 %v4579_v4 }
 0x1a3   :  { %3273 = vmatpush1.bf16.msra.mxu0 %v4582_v5  ;;  %2956 = vmatprep.subr.bf16.mxu1 %v4587_v6 }
 0x1a4   :  { %3274 = vmatprep.subr.bf16.mxu0 %v4590_v7 }
 0x1a6   :  { %2957 = vmatpush1.bf16.msra.mxu1 %v4585_v8 }
 0x1a7   :  { %3275 = vmatpush1.bf16.msra.mxu0 %v4588_v9  ;;  %2958 = vmatprep.subr.bf16.mxu1 %v4593_v58 }
 0x1a8   :  { %3276 = vmatprep.subr.bf16.mxu0 %v4596_v59 }
 0x1aa   :  { %2959 = vmatpush1.bf16.msra.mxu1 %v4591_v62 }
 0x1ab   :  { %3277 = vmatpush1.bf16.msra.mxu0 %v4594_v63  ;;  %2960 = vmatprep.subr.bf16.mxu1 %v4599_v11 }
 0x1ac   :  { %3278 = vmatprep.subr.bf16.mxu0 %v4602_v12 }
 0x1ae   :  { %2961 = vmatpush1.bf16.msra.mxu1 %v4597_v16 }
 0x1af   :  { %3279 = vmatpush1.bf16.msra.mxu0 %v4600_v17  ;;  %2962 = vmatprep.subr.bf16.mxu1 %v4605_v18 }
 0x1b0   :  { %3280 = vmatprep.subr.bf16.mxu0 %v4608_v19 }
 0x1b2   :  { %2963 = vmatpush1.bf16.msra.mxu1 %v4603_v20 }
 0x1b3   :  { %3281 = vmatpush1.bf16.msra.mxu0 %v4606_v21  ;;  %2964 = vmatprep.subr.bf16.mxu1 %v4611_v22 }
 0x1b4   :  { %3282 = vmatprep.subr.bf16.mxu0 %v4614_v23 }
 0x1b6   :  { %2965 = vmatpush1.bf16.msra.mxu1 %v4609_v10 }
 0x1b7   :  { %3283 = vmatpush1.bf16.msra.mxu0 %v4612_v13 }
 0x1b9   :  { %2967 = vmatmul.mubr.bf16.vlgmr.msra.gmra.mrb[0].mxu1 %v3508_v30 }
 0x1ba   :  { %3285 = vmatmul.mubr.bf16.vlgmr.msra.gmra.mrb[0].mxu0 %v3520_v31  ;;  %2976 = vmatprep.mubr.bf16.mxu1 %v3533_v32 }
 0x1bb   :  { %3294 = vmatprep.mubr.bf16.mxu0 %v3545_v33 }
 0x1c1   :  { %2977 = vmatmul.mubr.bf16.gmra.mrb[4].mxu1 %v3532_v34 }
 0x1c2   :  { %3295 = vmatmul.mubr.bf16.gmra.mrb[4].mxu0 %v3544_v35  ;;  %3457 = vmatprep.mubr.f32.mxu1 %v4772_v36 }
 0x28c   :  { %v2968_v37 = vpop.f32.mrb[0].mxu1 }
 0x28d   :  { %v3286_v38 = vpop.f32.mrb[0].mxu0  ;;  %v2970_v27 = vpop.f32.mrb[1].mxu1 }
 0x28e   :  { %v4918_v24 = vadd.f32 %v3286_v38, %v2968_v37  ;;  %v3288_v28 = vpop.f32.mrb[1].mxu0  ;;  %v2972_v39 = vpop.f32.mrb[2].mxu1 }
 0x28f   :  { %v4920_v29 = vadd.f32 %v3288_v28, %v2970_v27  ;;  %v3290_v40 = vpop.f32.mrb[2].mxu0  ;;  %v2974_v44 = vpop.f32.mrb[3].mxu1 }
 0x290   :  { %3332 = vst [vmem:[#allocation9] sm:$0xff] %v4918_v24  ;;  %v3340_v41 = vsub.f32 0.0, %v4918_v24  ;;  %v4924_v43 = vadd.f32 %v3290_v40, %v2972_v39  ;;  %v3292_v48 = vpop.f32.mrb[3].mxu0 }
 0x291   :  { %3333 = vst [vmem:[#allocation9 + $0x8] sm:$0xff] %v4920_v29  ;;  %v3341_v49 = vsub.f32 0.0, %v4920_v29  ;;  %v4928_v50 = vadd.f32 %v3292_v48, %v2974_v44 }
 0x292   :  { %v3348_v51 = vmul.f32 1.442695, %v3340_v41  ;;  %3334 = vst [vmem:[#allocation9 + $0x10] sm:$0xff] %v4924_v43  ;;  %v3342_v52 = vsub.f32 0.0, %v4924_v43 }
 0x293   :  { %v3350_v53 = vmul.f32 1.442695, %v3341_v49  ;;  %3335 = vst [vmem:[#allocation9 + $0x18] sm:$0xff] %v4928_v50  ;;  %v3343_v54 = vsub.f32 0.0, %v4928_v50 }
 0x294   :  { %4615 = vpow2.f32 %v3348_v51  ;;  %v3352_v55 = vmul.f32 1.442695, %v3342_v52  ;;  %v2978_v57 = vpop.f32.mrb[4].mxu1 }
 0x295   :  { %4617 = vpow2.f32 %v3350_v53  ;;  %v3354_v56 = vmul.f32 1.442695, %v3343_v54  ;;  %v3296_v42 = vpop.f32.mrb[4].mxu0  ;;  %v2980_v46 = vpop.f32.mrb[5].mxu1 }
 0x296   :  { %4619 = vpow2.f32 %v3352_v55  ;;  %v4934_v45 = vadd.f32 %v3296_v42, %v2978_v57  ;;  %v3298_v47 = vpop.f32.mrb[5].mxu0  ;;  %v2982_v61 = vpop.f32.mrb[6].mxu1 }
 0x297   :  { %4621 = vpow2.f32 %v3354_v56  ;;  %v4936_v60 = vadd.f32 %v3298_v47, %v2980_v46  ;;  %v3300_v0 = vpop.f32.mrb[6].mxu0  ;;  %v2984_v3 = vpop.f32.mrb[7].mxu1 }
 0x298   :  { %3336 = vst [vmem:[#allocation9 + $0x20] sm:$0xff] %v4934_v45  ;;  %v3344_v1 = vsub.f32 0.0, %v4934_v45  ;;  %v3945_v2 = vadd.f32 %v3300_v0, %v2982_v61  ;;  %v3302_v4 = vpop.f32.mrb[7].mxu0 }
 0x299   :  { %3337 = vst [vmem:[#allocation9 + $0x28] sm:$0xff] %v4936_v60  ;;  %v3345_v5 = vsub.f32 0.0, %v4936_v60  ;;  %v3946_v6 = vadd.f32 %v3302_v4, %v2984_v3 }
 0x29a   :  { %v3356_v7 = vmul.f32 1.442695, %v3344_v1  ;;  %3338 = vst [vmem:[#allocation9 + $0x30] sm:$0xff] %v3945_v2  ;;  %v3346_v8 = vsub.f32 0.0, %v3945_v2 }
 0x29b   :  { %v3358_v9 = vmul.f32 1.442695, %v3345_v5  ;;  %3339 = vst [vmem:[#allocation9 + $0x38] sm:$0xff] %v3946_v6  ;;  %v3347_v58 = vsub.f32 0.0, %v3946_v6 }
 0x29c   :  { %4623 = vpow2.f32 %v3356_v7  ;;  %v3360_v59 = vmul.f32 1.442695, %v3346_v8 }
 0x29d   :  { %4625 = vpow2.f32 %v3358_v9  ;;  %v3362_v62 = vmul.f32 1.442695, %v3347_v58 }
 0x29e   :  { %v4616_v63 = vpop.eup %4615  ;;  %4627 = vpow2.f32 %v3360_v59 }
 0x29f   :  { %v4618_v11 = vpop.eup %4617  ;;  %v3364_v12 = vadd.f32 1.0, %v4616_v63  ;;  %4629 = vpow2.f32 %v3362_v62 }
 0x2a0   :  { %v4620_v16 = vpop.eup %4619  ;;  %v3365_v17 = vadd.f32 1.0, %v4618_v11 }
 0x2a1   :  { %v4622_v18 = vpop.eup %4621  ;;  %4631 = vrcp.f32 %v3364_v12  ;;  %v3366_v19 = vadd.f32 1.0, %v4620_v16 }
 0x2a2   :  { %4633 = vrcp.f32 %v3365_v17  ;;  %v3367_v20 = vadd.f32 1.0, %v4622_v18 }
 0x2a3   :  { %4635 = vrcp.f32 %v3366_v19 }
 0x2a4   :  { %4637 = vrcp.f32 %v3367_v20 }
 0x2a6   :  { %v4624_v21 = vpop.eup %4623 }
 0x2a7   :  { %v4626_v22 = vpop.eup %4625  ;;  %v3368_v23 = vadd.f32 1.0, %v4624_v21 }
 0x2a8   :  { %v4628_v10 = vpop.eup %4627  ;;  %v3369_v13 = vadd.f32 1.0, %v4626_v22 }
 0x2a9   :  { %v4630_v14 = vpop.eup %4629  ;;  %4639 = vrcp.f32 %v3368_v23  ;;  %v3370_v15 = vadd.f32 1.0, %v4628_v10 }
 0x2aa   :  { %4641 = vrcp.f32 %v3369_v13  ;;  %v3371_v25 = vadd.f32 1.0, %v4630_v14 }
 0x2ab   :  { %v4632_v26 = vpop.eup %4631  ;;  %4643 = vrcp.f32 %v3370_v15 }
 0x2ac   :  { %v4634_v30 = vpop.eup %4633  ;;  %4645 = vrcp.f32 %v3371_v25  ;;  %v3380_v33 = vmul.f32 %v4632_v26, %v4918_v24 }
 0x2ad   :  { %v4636_v31 = vpop.eup %4635  ;;  %v3381_v35 = vmul.f32 %v4634_v30, %v4920_v29  ;;  %v3388_v29 = vld [vmem:[#allocation8] sm:$0xff] }
 0x2ae   :  { %v4638_v32 = vpop.eup %4637  ;;  %v3382_v34 = vmul.f32 %v4636_v31, %v4924_v43 }
 0x2af   :  { %v3383_v36 = vmul.f32 %v4638_v32, %v4928_v50 }
 0x2b0   :  { %v3933_v37 = vpack.c.bf16 %v3382_v34, %v3380_v33 }
 0x2b1   :  { %v3931_v38 = vpack.c.bf16 %v3383_v36, %v3381_v35 }
 0x2b3   :  { %v4640_v27 = vpop.eup %4639  ;;  %3932 = vmatprep.subr.bf16.mxu1 %v3931_v38 }
 0x2b4   :  { %v4642_v28 = vpop.eup %4641  ;;  %3934 = vmatpush1.bf16.msra.mxu1 %v3933_v37  ;;  %v3384_v41 = vmul.f32 %v4640_v27, %v4934_v45 }
 0x2b5   :  { %v4644_v39 = vpop.eup %4643  ;;  %v3385_v48 = vmul.f32 %v4642_v28, %v4936_v60 }
 0x2b6   :  { %v4646_v40 = vpop.eup %4645  ;;  %v3386_v44 = vmul.f32 %v4644_v39, %v3945_v2 }
 0x2b7   :  { %v3387_v24 = vmul.f32 %v4646_v40, %v3946_v6 }
 0x2b8   :  { %v3937_v49 = vpack.c.bf16 %v3386_v44, %v3384_v41 }
 0x2b9   :  { %v3935_v43 = vpack.c.bf16 %v3387_v24, %v3385_v48 }
 0x2bb   :  { %3936 = vmatprep.subr.bf16.mxu1 %v3935_v43 }
 0x2bc   :  { %3938 = vmatpush1.bf16.msra.mxu1 %v3937_v49 }
 0x2bf   :  { %3930 = vmatmul.mubr.msk.f32.vlgmr.msra.gmra.mrb[8].mxu1 %vm3389_vm0, %v3388_v29 }
 0x2c0   :  { %4724 = shalt.err (!%p4721_p0)
}
 0x2c1   :  { %s4725_s5 = scalar_lea.hbm %s4975_s3, 1024 }
 0x2c2   :  { %p4726_p1 = scmp.ne.s32.totalorder %s4975_s3, %s4725_s5  ;;  %p4729_p2 = scmp.lt.u32.totalorder %s4725_s5, %s4975_s3 }
 0x2c4   :  { %p4731_p3 = pnand %p4729_p2, %p4726_p1 }
 0x2c6   :  { %4734 = shalt.err (!%p4731_p3)
}
 0x2c7   :  { %s4774_s10 = smov 256   ;;  %s4775_s11 = smov 16  }
 0x2c8   :  { %3477 = dma.vmem_to_hbm [thread:$0]  %s3472_s27, 1024, %s4975_s3, [#allocation5], %s4774_s10, %s4774_s10, %s4775_s11  }
 0x2c9   :  { %s4776_s13 = smov [#allocation10]  }
 0x2ca   :  { %s3484_s14 = sshll.u32 %s4776_s13, 4  ;;  %s3485_s14 = int_to_ptr.vmem [resolvable:$true] %s3484_s14 }
 0x2cb   :  { %s4735_s15 = scalar_lea.vmem %s3485_s14, 256  ;;  %p4740_p5 = scmp.lt.s32.totalorder %s3485_s14, %s3485_s14 }
 0x2cc   :  { %p4736_p4 = scmp.ne.s32.totalorder %s3485_s14, %s4735_s15  ;;  %p4741_p6 = scmp.lt.s32.totalorder %s4735_s15, %s4735_s15 }
 0x2ce   :  { %p4742_p7 = por %p4741_p6, %p4740_p5 }
 0x2d0   :  { %p4743_p8 = pnand %p4742_p7, %p4736_p4 }
 0x392   :  { %v3459_v50 = vpop.f32.mrb[8].mxu1 }
 0x393   :  { %3464 = vst [vmem:[#allocation10] sm:$0xff] %v3459_v50  ;;  %v3461_v51 = vpop.f32.mrb[9].mxu1 }
 0x394   :  { %3465 = vst [vmem:[#allocation10 + $0x8] sm:$0xff] %v3461_v51 }
 0x395   :  { %4746 = shalt.err (!%p4743_p8)
}
 0x396   :  { %s4747_s18 = scalar_lea.hbm %s4976_s4, 256 }
 0x397   :  { %p4748_p9 = scmp.ne.s32.totalorder %s4976_s4, %s4747_s18  ;;  %p4751_p10 = scmp.lt.u32.totalorder %s4747_s18, %s4976_s4 }
 0x399   :  { %p4753_p11 = pnand %p4751_p10, %p4748_p9 }
 0x39b   :  { %4756 = shalt.err (!%p4753_p11)
}
 0x39c   :  { %3487 = dma.vmem_to_hbm [thread:$0]  %s3485_s14, 256, %s4976_s4, [#allocation11]  }
 0x39d   :  { %4761 = dma.done.wait [#allocation5], 1024  }
 0x39e   :  { %4762 = vsyncadd [#allocation5], 4294966272 }
 0x39f   :  { %4763 = dma.done.wait [#allocation11], 256  }
 0x3a0   :  { %4764 = vsyncadd [#allocation11], 4294967040 }
 0x3a1   :  { %3494 = vsyncpa [#allocation4], 1 }
 0x3a2   :  { %3495 = vsyncpa [#allocation7], 1 }
 0x3a3   :  { %3496 = vsyncpa [#allocation5], 1 }
 0x3a4   :  { %3497 = vsyncpa [#allocation11], 1 }

</bundles_post_ra>
